<compile_context>
chip_gen: v7x
topology: tpu7x:2x2x1
jax: 0.10.0
libtpu: 0.0.40
codegen_flags: <defaults>
</compile_context>

<pallas_src>
import functools

import jax
import jax.numpy as jnp
import numpy as np
from jax.experimental import pallas as pl
from jax.experimental.pallas import tpu as pltpu

_HIGHEST = jax.lax.Precision.HIGHEST


def _round_up(x, m):
    return ((x + m - 1) // m) * m


def _pick_tq_tile(tq):
    """Largest multiple-of-8 tile <= 128 that divides Tq (else full-dim block)."""
    for cand in (128, 64, 32, 16, 8):
        if tq % cand == 0:
            return cand
    return tq  # block == full array dim is always a legal block shape


def _make_bahdanau_kernel(n_units, tk, tk_pad, tq_tile, use_bf16_tanh):
    def kernel(q_ref, k_ref, wq_ref, wm_ref, la_ref, ctx_ref, w_ref, pkt_ref):
        """One grid step == one (batch, query-tile) pair.

        q_ref  : (tq_tile, Dq)  VMEM            ctx_ref: (tq_tile, Dm)     VMEM out
        k_ref  : (tk_pad, Dm)   VMEM            w_ref  : (tq_tile, tk_pad) VMEM out
        wq_ref : (N, Dq)        VMEM (replicated, nn.Linear [out, in] layout)
        wm_ref : (N, Dm)        VMEM (replicated)
        la_ref : (N, 1)         VMEM (replicated)
        pkt_ref: (N, tk_pad)    VMEM scratch — keys projection, n-major
        """
        # Projections on the MXU.  dot_general contracts directly on the feature
        # dim, so neither weight needs a transpose and pk lands n-major.  Left at
        # HIGHEST precision: these tiny matmuls sit in MXU slack (review: skip).
        pq = jax.lax.dot_general(                                   # (tq_tile, N)
            q_ref[...], wq_ref[...], (((1,), (1,)), ((), ())),
            precision=_HIGHEST, preferred_element_type=jnp.float32)
        pkt_ref[...] = jax.lax.dot_general(                         # (N, tk_pad)
            wm_ref[...], k_ref[...], (((1,), (1,)), ((), ())),
            precision=_HIGHEST, preferred_element_type=jnp.float32)
        # NOTE: pkt is recomputed for each query tile of the same batch element;
        # it is a tiny MXU matmul hidden under the EUP-bound tanh loop.

        # Hoisted: one-hot selector iota (JAX does not CSE broadcasts/iotas).
        iota_n = jax.lax.broadcasted_iota(jnp.int32, (n_units, 1), 0)

        def score_step(n, acc):
            # pq[:, n] as a (tq_tile, 1) column via a one-hot matmul: keeps the
            # lane->sublane move on the otherwise-idle MXU instead of a dynamic
            # lane slice / per-step XLU relayout.
            onehot = (iota_n == n).astype(jnp.float32)               # (N, 1)
            pq_n = jnp.dot(pq, onehot, precision=_HIGHEST,
                           preferred_element_type=jnp.float32)       # (tq_tile, 1)
            pk_n = pkt_ref[pl.ds(n, 1), :]                           # (1, tk_pad)
            la_n = la_ref[pl.ds(n, 1), :]                            # (1, 1)
            s = pq_n + pk_n                                          # (tq_tile, tk_pad)
            if use_bf16_tanh:
                # ~2x on the EUP-bound tanh on v6e/v7x; do NOT enable on v5e.
                t = jnp.tanh(s.astype(jnp.bfloat16)).astype(jnp.float32)
            else:
                t = jnp.tanh(s)
            return acc + la_n * t                                    # f32 VALU FMA

        # fori_loop (not a Python-unrolled loop) keeps live ranges bounded; the
        # (tq_tile, tk_pad, N) additive tensor is never materialized and no
        # cross-lane reduce over N remains — the accumulator is already
        # lane-dense in w_ref's layout.
        scores = jax.lax.fori_loop(
            0, n_units, score_step,
            jnp.zeros((tq_tile, tk_pad), jnp.float32))

        # Mask padded key lanes so they get exactly zero attention weight.
        if tk_pad != tk:
            lane = jax.lax.broadcasted_iota(jnp.int32, (tq_tile, tk_pad), 1)
            scores = jnp.where(lane < tk, scores, -1e30)

        # Softmax over the (lane-dense, padded) key axis.
        m = jnp.max(scores, axis=-1, keepdims=True)
        e = jnp.exp(scores - m)
        denom = jnp.sum(e, axis=-1, keepdims=True)
        # Exact reciprocal keeps the 1e-5 parity check; it is off the critical
        # path anyway (review: do not optimize it).
        weights = e * pl.reciprocal(denom, approx=False)
        w_ref[...] = weights

        # context = weights @ keys on the MXU (padded key rows carry 0 weight).
        ctx_ref[...] = jnp.dot(weights, k_ref[...], precision=_HIGHEST,
                               preferred_element_type=jnp.float32
                               ).astype(ctx_ref.dtype)

    return kernel


@functools.partial(jax.jit, static_argnames=("use_bf16_tanh",))
def bahdanau_attention(query, keys, w_query, w_memory, linear_att,
                       use_bf16_tanh=False):
    B, Tq, Dq = query.shape
    _, Tk, Dm = keys.shape
    N = w_query.shape[0]

    # --- Tiling ---------------------------------------------------------------
    tq_tile = _pick_tq_tile(Tq)
    n_tq = Tq // tq_tile

    # Lane-dense weights output: pad the key axis to a multiple of 128 so the
    # (tq_tile, tk_pad) output block stores unmasked; padded lanes are masked to
    # ~-inf inside the kernel and sliced off below.
    tk_pad = _round_up(Tk, 128)
    keys_p = keys if tk_pad == Tk else jnp.pad(
        keys, ((0, 0), (0, tk_pad - Tk), (0, 0)))

    la2d = jnp.reshape(linear_att, (N, 1))

    kernel = _make_bahdanau_kernel(N, Tk, tk_pad, tq_tile, use_bf16_tanh)

    # --- Explicit scoped-VMEM budget -------------------------------------------
    # Double-buffered in/out blocks + scratch, 2x headroom, capped at 48 MiB so
    # the same tiling also fits v7x's 64 MiB physical VMEM (v5e/v6e: 128 MiB).
    f32b = 4
    block_bytes = f32b * (
        2 * tq_tile * Dq            # query block
        + 2 * tk_pad * Dm           # keys block
        + 2 * N * Dq + 2 * N * Dm   # replicated projection weights
        + 2 * N * 1                 # linear_att
        + 2 * tq_tile * Dm          # context out block
        + 2 * tq_tile * tk_pad      # weights out block
        + N * tk_pad)               # pk^T scratch
    vmem_limit = int(min(48 << 20, 2 * block_bytes + (4 << 20)))

    grid_spec = pltpu.PrefetchScalarGridSpec(
        num_scalar_prefetch=0,
        grid=(B, n_tq),
        in_specs=[
            pl.BlockSpec((None, tq_tile, Dq), lambda b, qi: (b, qi, 0)),  # query
            pl.BlockSpec((None, tk_pad, Dm), lambda b, qi: (b, 0, 0)),    # keys (padded)
            pl.BlockSpec((N, Dq), lambda b, qi: (0, 0)),                  # W_q [out, in]
            pl.BlockSpec((N, Dm), lambda b, qi: (0, 0)),                  # W_m [out, in]
            pl.BlockSpec((N, 1), lambda b, qi: (0, 0)),                   # linear_att
        ],
        out_specs=[
            pl.BlockSpec((None, tq_tile, Dm), lambda b, qi: (b, qi, 0)),      # context
            pl.BlockSpec((None, tq_tile, tk_pad), lambda b, qi: (b, qi, 0)),  # weights
        ],
        scratch_shapes=[
            pltpu.VMEM((N, tk_pad), jnp.float32),   # pk^T (n-major)
        ],
    )

    context, weights_p = pl.pallas_call(
        kernel,
        out_shape=(
            jax.ShapeDtypeStruct((B, Tq, Dm), jnp.float32),
            jax.ShapeDtypeStruct((B, Tq, tk_pad), jnp.float32),
        ),
        grid_spec=grid_spec,
        compiler_params=pltpu.CompilerParams(
            dimension_semantics=("parallel", "parallel"),
            vmem_limit_bytes=vmem_limit),
    )(query, keys_p, w_query, w_memory, la2d)

    # TODO(synk): for very long Tk, add a Tk grid axis (last, "arbitrary") with
    # flash-style online softmax instead of holding the full padded key axis.
    return context, weights_p[:, :, :Tk]


def bahdanau_reference(query, keys, w_query, w_memory, linear_att):
    """Plain-JAX reference mirroring the PyTorch forward."""
    pq = jnp.einsum("btd,nd->btn", query, w_query, precision=_HIGHEST)
    pk = jnp.einsum("btd,nd->btn", keys, w_memory, precision=_HIGHEST)
    sum_qk = pq[:, :, None, :] + pk[:, None, :, :]
    scores = jnp.einsum("bqkn,n->bqk", jnp.tanh(sum_qk), linear_att,
                        precision=_HIGHEST)
    weights = jax.nn.softmax(scores, axis=-1)
    context = jnp.einsum("bqk,bkd->bqd", weights, keys, precision=_HIGHEST)
    return context, weights


if __name__ == "__main__":
    # Small shapes consistent with the module's forward.
    B, Tq, Tk = 2, 8, 8
    query_dim, memory_dim, num_units = 16, 16, 32

    key = jax.random.PRNGKey(0)
    k1, k2, k3, k4, k5 = jax.random.split(key, 5)

    query = jax.random.normal(k1, (B, Tq, query_dim), dtype=jnp.float32)
    keys = jax.random.normal(k2, (B, Tk, memory_dim), dtype=jnp.float32)

    # Deterministic parameter init (nn.Linear weight convention: [out, in]).
    w_query = jax.random.normal(k3, (num_units, query_dim), dtype=jnp.float32) * 0.1
    w_memory = jax.random.normal(k4, (num_units, memory_dim), dtype=jnp.float32) * 0.1
    linear_att = jax.random.normal(k5, (num_units,), dtype=jnp.float32) * 0.1
    # TODO(synk): self.alignment_layer exists in __init__ but is unused in forward; omitted.

    context, weights = bahdanau_attention(query, keys, w_query, w_memory, linear_att)
    context = jax.block_until_ready(context)
    weights = jax.block_until_ready(weights)

    ref_ctx, ref_w = bahdanau_reference(query, keys, w_query, w_memory, linear_att)
    np.testing.assert_allclose(np.asarray(context), np.asarray(ref_ctx),
                               rtol=1e-5, atol=1e-5)
    np.testing.assert_allclose(np.asarray(weights), np.asarray(ref_w),
                               rtol=1e-5, atol=1e-5)

    print("KERNEL_OK")
</pallas_src>

<mosaic_0001>
module attributes {stable_mosaic.version = 11 : i64} {
  func.func @kernel(%arg0: i32, %arg1: i32, %arg2: memref<1x8x16xf32, #tpu.memory_space<vmem>>, %arg3: memref<1x128x16xf32, #tpu.memory_space<vmem>>, %arg4: memref<32x16xf32, #tpu.memory_space<vmem>>, %arg5: memref<32x16xf32, #tpu.memory_space<vmem>>, %arg6: memref<32x1xf32, #tpu.memory_space<vmem>>, %arg7: memref<1x8x16xf32, #tpu.memory_space<vmem>>, %arg8: memref<1x8x128xf32, #tpu.memory_space<vmem>>, %arg9: memref<32x128xf32, #tpu.memory_space<vmem>>) attributes {dimension_semantics = [#tpu.dimension_semantics<parallel>, #tpu.dimension_semantics<parallel>], iteration_bounds = array<i64: 2, 1>, scalar_prefetch = 0 : i64, scratch_operands = 1 : i64, tpu.core_type = #tpu.core_type<tc>, window_params = [{transform_indices = @transform_0, window_bounds = array<i64: 1, 8, 16>}, {transform_indices = @transform_1, window_bounds = array<i64: 1, 128, 16>}, {pipeline_mode = #tpu.pipeline_mode<synchronous>, transform_indices = @transform_2, window_bounds = array<i64: 32, 16>}, {pipeline_mode = #tpu.pipeline_mode<synchronous>, transform_indices = @transform_3, window_bounds = array<i64: 32, 16>}, {pipeline_mode = #tpu.pipeline_mode<synchronous>, transform_indices = @transform_4, window_bounds = array<i64: 32, 1>}, {transform_indices = @transform_5, window_bounds = array<i64: 1, 8, 16>}, {transform_indices = @transform_6, window_bounds = array<i64: 1, 8, 128>}]} {
    %c0 = arith.constant 0 : index
    %c0_0 = arith.constant 0 : index
    %c0_1 = arith.constant 0 : index
    %0 = vector.load %arg2[%c0, %c0_0, %c0_1] : memref<1x8x16xf32, #tpu.memory_space<vmem>>, vector<1x8x16xf32>
    %1 = vector.shape_cast %0 : vector<1x8x16xf32> to vector<8x16xf32>
    %c0_2 = arith.constant 0 : index
    %c0_3 = arith.constant 0 : index
    %2 = vector.load %arg4[%c0_2, %c0_3] : memref<32x16xf32, #tpu.memory_space<vmem>>, vector<32x16xf32>
    %cst = arith.constant dense<0.000000e+00> : vector<8x32xf32>
    %3 = tpu.matmul %1, %2, %cst {dimension_numbers = #tpu.dot_dimension_numbers<[1], [1], [0], [0], [0, 0, 1, 0], [], []>, precision = #tpu.contract_precision<fp32>} : vector<8x16xf32>, vector<32x16xf32>, vector<8x32xf32> -> vector<8x32xf32>
    %c0_4 = arith.constant 0 : index
    %c0_5 = arith.constant 0 : index
    %4 = vector.load %arg5[%c0_4, %c0_5] : memref<32x16xf32, #tpu.memory_space<vmem>>, vector<32x16xf32>
    %c0_6 = arith.constant 0 : index
    %c0_7 = arith.constant 0 : index
    %c0_8 = arith.constant 0 : index
    %5 = vector.load %arg3[%c0_6, %c0_7, %c0_8] : memref<1x128x16xf32, #tpu.memory_space<vmem>>, vector<1x128x16xf32>
    %6 = vector.shape_cast %5 : vector<1x128x16xf32> to vector<128x16xf32>
    %cst_9 = arith.constant dense<0.000000e+00> : vector<32x128xf32>
    %7 = tpu.matmul %4, %6, %cst_9 {dimension_numbers = #tpu.dot_dimension_numbers<[1], [1], [0], [0], [0, 0, 1, 0], [], []>, precision = #tpu.contract_precision<fp32>} : vector<32x16xf32>, vector<128x16xf32>, vector<32x128xf32> -> vector<32x128xf32>
    %c0_10 = arith.constant 0 : index
    %c0_11 = arith.constant 0 : index
    %8 = vector.load %arg9[%c0_10, %c0_11] : memref<32x128xf32, #tpu.memory_space<vmem>>, vector<32x128xf32>
    tpu.vector_store %arg9[%c0_10, %c0_11], %7 {strides = array<i32>} : memref<32x128xf32, #tpu.memory_space<vmem>>, vector<32x128xf32>,
    %9 = tpu.iota {dimensions = array<i32: 0>} : vector<32x1xi32>
    %cst_12 = arith.constant 0.000000e+00 : f32
    %10 = vector.broadcast %cst_12 : f32 to vector<8x128xf32>
    %c0_i32 = arith.constant 0 : i32
    %c32_i32 = arith.constant 32 : i32
    %11 = arith.addi %c0_i32, %c32_i32 : i32
    %c1_i32 = arith.constant 1 : i32
    %12 = scf.for %arg10 = %c0_i32 to %11 step %c1_i32 iter_args(%arg11 = %10) -> (vector<8x128xf32>)  : i32 {
      %37 = vector.broadcast %arg10 : i32 to vector<32x1xi32>
      %38 = arith.cmpi eq, %9, %37 : vector<32x1xi32>
      %39 = arith.extui %38 : vector<32x1xi1> to vector<32x1xi32>
      %40 = arith.sitofp %39 : vector<32x1xi32> to vector<32x1xf32>
      %cst_27 = arith.constant dense<0.000000e+00> : vector<8x1xf32>
      %41 = tpu.matmul %3, %40, %cst_27 {dimension_numbers = #tpu.dot_dimension_numbers<[1], [0], [0], [1], [0, 0, 1, 1], [], []>, precision = #tpu.contract_precision<fp32>} : vector<8x32xf32>, vector<32x1xf32>, vector<8x1xf32> -> vector<8x1xf32>
      %42 = arith.index_cast %arg10 : i32 to index
      %c0_28 = arith.constant 0 : index
      %43 = vector.load %arg9[%42, %c0_28] : memref<32x128xf32, #tpu.memory_space<vmem>>, vector<1x128xf32>
      %44 = arith.index_cast %arg10 : i32 to index
      %c0_29 = arith.constant 0 : index
      %45 = vector.load %arg6[%44, %c0_29] : memref<32x1xf32, #tpu.memory_space<vmem>>, vector<1x1xf32>
      %46 = vector.broadcast %41 : vector<8x1xf32> to vector<8x128xf32>
      %47 = vector.broadcast %43 : vector<1x128xf32> to vector<8x128xf32>
      %48 = arith.addf %46, %47 : vector<8x128xf32>
      %49 = math.tanh %48 : vector<8x128xf32>
      %50 = vector.broadcast %45 : vector<1x1xf32> to vector<8x128xf32>
      %51 = arith.mulf %50, %49 : vector<8x128xf32>
      %52 = arith.addf %arg11, %51 : vector<8x128xf32>
      scf.yield %52 : vector<8x128xf32>
    }
    %c32_i32_13 = arith.constant 32 : i32
    %13 = tpu.iota {dimensions = array<i32: 1>} : vector<8x128xi32>
    %c8_i32 = arith.constant 8 : i32
    %14 = vector.broadcast %c8_i32 : i32 to vector<8x128xi32>
    %15 = arith.cmpi slt, %13, %14 : vector<8x128xi32>
    %cst_14 = arith.constant -1.000000e+30 : f32
    %16 = vector.broadcast %cst_14 : f32 to vector<8x128xf32>
    %17 = arith.select %15, %12, %16 : vector<8x128xi1>, vector<8x128xf32>
    %cst_15 = arith.constant dense<0xFF800000> : vector<8xf32>
    %18 = vector.multi_reduction <maximumf>, %17, %cst_15 [1] : vector<8x128xf32> to vector<8xf32>
    %19 = vector.shape_cast %18 : vector<8xf32> to vector<8x1xf32>
    %20 = vector.broadcast %19 : vector<8x1xf32> to vector<8x128xf32>
    %21 = arith.subf %17, %20 : vector<8x128xf32>
    %22 = math.exp %21 : vector<8x128xf32>
    %cst_16 = arith.constant dense<0.000000e+00> : vector<8xf32>
    %23 = vector.multi_reduction <add>, %22, %cst_16 [1] : vector<8x128xf32> to vector<8xf32>
    %24 = vector.shape_cast %23 : vector<8xf32> to vector<8x1xf32>
    %25 = tpu.reciprocal %24 : vector<8x1xf32> -> vector<8x1xf32>
    %26 = vector.broadcast %25 : vector<8x1xf32> to vector<8x128xf32>
    %27 = arith.mulf %22, %26 : vector<8x128xf32>
    %c0_17 = arith.constant 0 : index
    %c0_18 = arith.constant 0 : index
    %c0_19 = arith.constant 0 : index
    %28 = vector.load %arg8[%c0_17, %c0_18, %c0_19] : memref<1x8x128xf32, #tpu.memory_space<vmem>>, vector<1x8x128xf32>
    %29 = vector.shape_cast %28 : vector<1x8x128xf32> to vector<8x128xf32>
    %30 = vector.shape_cast %27 : vector<8x128xf32> to vector<1x8x128xf32>
    tpu.vector_store %arg8[%c0_17, %c0_18, %c0_19], %30 {strides = array<i32>} : memref<1x8x128xf32, #tpu.memory_space<vmem>>, vector<1x8x128xf32>,
    %c0_20 = arith.constant 0 : index
    %c0_21 = arith.constant 0 : index
    %c0_22 = arith.constant 0 : index
    %31 = vector.load %arg3[%c0_20, %c0_21, %c0_22] : memref<1x128x16xf32, #tpu.memory_space<vmem>>, vector<1x128x16xf32>
    %32 = vector.shape_cast %31 : vector<1x128x16xf32> to vector<128x16xf32>
    %cst_23 = arith.constant dense<0.000000e+00> : vector<8x16xf32>
    %33 = tpu.matmul %27, %32, %cst_23 {dimension_numbers = #tpu.dot_dimension_numbers<[1], [0], [0], [1], [0, 0, 1, 1], [], []>, precision = #tpu.contract_precision<fp32>} : vector<8x128xf32>, vector<128x16xf32>, vector<8x16xf32> -> vector<8x16xf32>
    %c0_24 = arith.constant 0 : index
    %c0_25 = arith.constant 0 : index
    %c0_26 = arith.constant 0 : index
    %34 = vector.load %arg7[%c0_24, %c0_25, %c0_26] : memref<1x8x16xf32, #tpu.memory_space<vmem>>, vector<1x8x16xf32>
    %35 = vector.shape_cast %34 : vector<1x8x16xf32> to vector<8x16xf32>
    %36 = vector.shape_cast %33 : vector<8x16xf32> to vector<1x8x16xf32>
    tpu.vector_store %arg7[%c0_24, %c0_25, %c0_26], %36 {strides = array<i32>} : memref<1x8x16xf32, #tpu.memory_space<vmem>>, vector<1x8x16xf32>,
    return
  }
  func.func @transform_0(%arg0: i32, %arg1: i32) -> (i32, i32, i32) {
    %c0_i32 = arith.constant 0 : i32
    %c0_i32_0 = arith.constant 0 : i32
    return %arg0, %arg1, %c0_i32 : i32, i32, i32
  }
  func.func @transform_1(%arg0: i32, %arg1: i32) -> (i32, i32, i32) {
    %c0_i32 = arith.constant 0 : i32
    %c0_i32_0 = arith.constant 0 : i32
    %c0_i32_1 = arith.constant 0 : i32
    return %arg0, %c0_i32, %c0_i32_0 : i32, i32, i32
  }
  func.func @transform_2(%arg0: i32, %arg1: i32) -> (i32, i32) {
    %c0_i32 = arith.constant 0 : i32
    %c0_i32_0 = arith.constant 0 : i32
    %c0_i32_1 = arith.constant 0 : i32
    return %c0_i32, %c0_i32_0 : i32, i32
  }
  func.func @transform_3(%arg0: i32, %arg1: i32) -> (i32, i32) {
    %c0_i32 = arith.constant 0 : i32
    %c0_i32_0 = arith.constant 0 : i32
    %c0_i32_1 = arith.constant 0 : i32
    return %c0_i32, %c0_i32_0 : i32, i32
  }
  func.func @transform_4(%arg0: i32, %arg1: i32) -> (i32, i32) {
    %c0_i32 = arith.constant 0 : i32
    %c0_i32_0 = arith.constant 0 : i32
    %c0_i32_1 = arith.constant 0 : i32
    return %c0_i32, %c0_i32_0 : i32, i32
  }
  func.func @transform_5(%arg0: i32, %arg1: i32) -> (i32, i32, i32) {
    %c0_i32 = arith.constant 0 : i32
    %c0_i32_0 = arith.constant 0 : i32
    return %arg0, %arg1, %c0_i32 : i32, i32, i32
  }
  func.func @transform_6(%arg0: i32, %arg1: i32) -> (i32, i32, i32) {
    %c0_i32 = arith.constant 0 : i32
    %c0_i32_0 = arith.constant 0 : i32
    return %arg0, %arg1, %c0_i32 : i32, i32, i32
  }
}

</mosaic_0001>

<bundles_post_ra>
// kernel: bahdanau_attention.1
= control target key start
LH: loop header
LB: loop body
LE: loop exit
PB: predicated region body
PF: predicated region fallthrough
CT: control target
= control target key end

     0   :  { %12 = vsyncpa [#allocation4], 0  ;;  %s5607_s0 = inlined_call_operand.vmem [shape: f32[2,8,16], index: 0, kind: input, shape index: {}]   ;;  %s5608_s1 = inlined_call_operand.vmem [shape: f32[2,128,16], index: 1, kind: input, shape index: {}]   ;;  %s5609_s2 = inlined_call_operand.vmem [shape: f32[32,16], index: 2, kind: input, shape index: {}]   ;;  %s5610_s3 = inlined_call_operand.vmem [shape: f32[32,16], index: 3, kind: input, shape index: {}]   ;;  %s5611_s4 = inlined_call_operand.vmem [shape: f32[32,1], index: 4, kind: input, shape index: {}]   ;;  %s5612_s5 = inlined_call_operand.hbm [shape: f32[2,8,16], index: 5, kind: output, shape index: {0}]   ;;  %s5613_s6 = inlined_call_operand.hbm [shape: f32[2,8,128], index: 6, kind: output, shape index: {1}]  }
   0x1   :  { %14 = vsyncpa [#allocation4 + $0x1], 0 }
   0x2   :  { %15 = vsyncpa [#allocation6], 0 }
   0x3   :  { %17 = vsyncpa [#allocation6 + $0x1], 0  ;;  %s4640_s21 = smov 0   ;;  %s4642_s22 = smov 0  }
   0x4   :  { %s4644_s23 = smov 0   ;;  %s4646_s24 = smov 0  }
   0x5   :  { %s4648_s25 = smov 0   ;;  %s4650_s26 = smov 0  }
   0x6 LB: > { %s3032_s27 = sadd.s32 4294967295, %s4585_s26   ;;  %s3033_s28 = sadd.s32 4294967294, %s4585_s26   ;;  %s4585_s26 = sphi %s4650_s26, %s23_s26   ;;  %s4581_s25 = sphi %s4648_s25, %s5645_s25   ;;  %s4577_s24 = sphi %s4646_s24, %s5644_s24   ;;  %s4573_s23 = sphi %s4644_s23, %s5643_s23   ;;  %s4569_s22 = sphi %s4642_s22, %s5642_s22   ;;  %s4565_s21 = sphi %s4640_s21, %s5641_s21  }
   0x7   : > { %s35_s29 = sadd.s32 1, %s4581_s25  ;;  %s161_s30 = sadd.s32 1, %s4573_s23 }
   0x8   : > { %p37_p0 = scmp.ge.s32.totalorder %s35_s29, 2  ;;  %p171_p1 = scmp.ne.s32.totalorder %s4573_s23, %s4569_s22 }
   0x9   : > { %p172_p2 = scmp.eq.s32.totalorder %s3032_s27, 1  ;;  %p177_p3 = scmp.ne.s32.totalorder %s4569_s22, %s4565_s21 }
   0xa   : > { %s5647_s29 = smov (%p37_p0, %s35_s29), 0  ;;  %p178_p5 = scmp.eq.s32.totalorder %s3033_s28, 1 }
   0xb   : > { %p4680_p4 = por %p172_p2, %p171_p1  ;;  %s156_s8 = ssub.s32 %s4581_s25, %s5647_s29 }
   0xc   : > { %p3036_p6 = scmp.ge.s32.totalorder %s4585_s26, 1  ;;  %p159_p7 = scmp.eq.s32.totalorder %s156_s8, 0 }
   0xd   : > { %p4687_p8 = por %p178_p5, %p177_p3  ;;  %p251_p9 = scmp.lt.s32.totalorder %s4585_s26, 3 }
   0xe   : > { %s4693_s10 = scalar_select %p159_p7, %s4573_s23, %s161_s30  }
   0xf   : > { %p252_p10 = pnand %p3036_p6, %p251_p9 }
  0x10   : > { %s4696_s11 = sand.u32 (!%p252_p10), 1, %s4569_s22   ;;  %v306_v0 = vld [vmem:[%s5609_s2] sm:$0xff] (!%p252_p10)  ;;  %v307_v1 = vld [vmem:[%s5609_s2 + $0x8] sm:$0xff] (!%p252_p10)  ;;  %vm310_vm0 = vcmask (!%p252_p10), 130048   ;;  %v308_v2 = vld [vmem:[%s5609_s2 + $0x10] sm:$0xff] (!%p252_p10)  ;;  %v4595_v3 = vmov (!%p252_p10), 0.0|0.0  }
  0x11   : > { %255 = sbr.rel (%p252_p10) target bundleno = 1516 (0x5ec), region = 40  ;;  %s3037_s18 = sshll.u32 (!%p252_p10), %s4696_s11, 3  ;;  %3918 = vmatprep.subr.bf16.mxu0 (!%p252_p10), %v4595_v3  ;;  %v315_v4 = vsel (!%p252_p10), %vm310_vm0, %v306_v0, 0  ;;  %v318_v5 = vsel (!%p252_p10), %vm310_vm0, %v307_v1, 0  ;;  %v309_v6 = vld [vmem:[%s5609_s2 + $0x18] sm:$0xff] (!%p252_p10)  ;;  %v321_v7 = vsel (!%p252_p10), %vm310_vm0, %v308_v2, 0 }
  0x12   : > { %p293_p11 = scmp.lt.s32.totalorder (!%p252_p10), %s4577_s24, 1  ;;  %v327_v8 = vand.u32 (!%p252_p10), 4294901760, %v315_v4  ;;  %v330_v9 = vand.u32 (!%p252_p10), 4294901760, %v318_v5  ;;  %v324_v10 = vsel (!%p252_p10), %vm310_vm0, %v309_v6, 0  ;;  %v333_v14 = vand.u32 (!%p252_p10), 4294901760, %v321_v7  ;;  %s5178_s14 = scalar_lea.vmem (!%p252_p10), [#allocation3], %s3037_s18 }
  0x13   : > { %vm4596_vm1 = vmmov (!%p252_p10), 0   ;;  %v4597_v15 = vmov (!%p252_p10), 0.0   ;;  %v336_v16 = vand.u32 (!%p252_p10), 4294901760, %v324_v10  ;;  %s5182_s15 = scalar_lea.vmem (!%p252_p10), [#allocation5], %s3037_s18 }
  0x14   : > { %v4718_v11 = vpack.c.bf16 (!%p252_p10), %v330_v9, %v327_v8  ;;  %v4720_v12 = vsub.f32 (!%p252_p10), %v315_v4, %v327_v8  ;;  %v4722_v13 = vsub.f32 (!%p252_p10), %v318_v5, %v330_v9  ;;  %3356 = vmatprep.mubr.msk.f32.mxu0 (!%p252_p10), %vm4596_vm1, %v4597_v15  ;;  %v4727_v17 = vsub.f32 (!%p252_p10), %v321_v7, %v333_v14  ;;  %v811_v5 = vld [vmem:[%s5610_s3] sm:$0xff] (!%p252_p10) }
  0x15   : > { %v4740_v20 = vsub.f32 (!%p252_p10), %v324_v10, %v336_v16  ;;  %v4763_v34 = vpack.c.bf16 (!%p252_p10), %v336_v16, %v333_v14  ;;  %v812_v10 = vld [vmem:[%s5610_s3 + $0x8] sm:$0xff] (!%p252_p10) }
  0x16   : > { %3920 = vmatpush3.bf16.xpose.msra.mxu0 (!%p252_p10), %v4718_v11  ;;  %v5620_v18 = vand.u32 (!%p252_p10), 4294901760, %v4720_v12  ;;  %v5619_v19 = vand.u32 (!%p252_p10), 4294901760, %v4722_v13  ;;  %v5615_v37 = vand.u32 (!%p252_p10), 4294901760, %v4727_v17 }
  0x17   : > { %3921 = vmatprep.subr.bf16.mxu0 (!%p252_p10), %v4595_v3  ;;  %v5614_v42 = vand.u32 (!%p252_p10), 4294901760, %v4740_v20 }
  0x18   : > { %s294_s27 = scalar_select %p293_p11, %s4577_s24, 1  ;;  %v409_v27 = vsub.f32 %v4720_v12, %v5620_v18  ;;  %v416_v33 = vsub.f32 %v4722_v13, %v5619_v19  ;;  %v4800_v56 = vsub.f32 %v4727_v17, %v5615_v37 }
  0x19   : > { %v430_v58 = vsub.f32 %v4740_v20, %v5614_v42 }
  0x1a   : > { %s3065_s28 = sshll.u32 %s294_s27, 7  ;;  %s3039_s30 = sshll.u32 %s294_s27, 3  ;;  %v410_v43 = vand.u32 4294901760, %v409_v27  ;;  %v417_v49 = vand.u32 4294901760, %v416_v33 }
  0x1b   : > { %s4732_s13 = scalar_lea.vmem %s5608_s1, %s3065_s28  ;;  %s299_s16 = scalar_lea.vmem %s5607_s0, %s3039_s30 }
  0x1c   : > { %v815_v21 = vld [vmem:[%s4732_s13] sm:$0xff]  ;;  %v816_v22 = vld [vmem:[%s4732_s13 + $0x8] sm:$0xff]  ;;  %v817_v28 = vld [vmem:[%s4732_s13 + $0x10] sm:$0xff]  ;;  %v3925_v7 = vpack.c.bf16 %v417_v49, %v410_v43  ;;  %v835_v43 = vsel %vm310_vm0, %v812_v10, 0  ;;  %v431_v49 = vand.u32 4294901760, %v430_v58 }
  0x1d   : > { %v305_v23 = vld [vmem:[%s299_s16] sm:$0xff]  ;;  %v4745_v24 = vsel %vm310_vm0, %v815_v21, 0  ;;  %v4748_v25 = vsel %vm310_vm0, %v816_v22, 0  ;;  %v818_v29 = vld [vmem:[%s4732_s13 + $0x18] sm:$0xff]  ;;  %v850_v35 = vsel %vm310_vm0, %v817_v28, 0  ;;  %v820_v46 = vld [vmem:[%s4732_s13 + $0x28] sm:$0xff] }
  0x1e   : > { %v312_v26 = vsel %vm310_vm0, %v305_v23, 0  ;;  %v5618_v30 = vand.u32 4294901760, %v4745_v24  ;;  %v5617_v31 = vand.u32 4294901760, %v4748_v25  ;;  %v853_v36 = vsel %vm310_vm0, %v818_v29, 0  ;;  %v819_v38 = vld [vmem:[%s4732_s13 + $0x20] sm:$0xff]  ;;  %v821_v51 = vld [vmem:[%s4732_s13 + $0x30] sm:$0xff]  ;;  %3923 = vmatpush3.bf16.xpose.msra.mxu0 %v4763_v34 }
  0x1f   : > { %v4758_v32 = vand.u32 4294901760, %v312_v26  ;;  %v898_v44 = vand.u32 4294901760, %v850_v35  ;;  %v901_v45 = vand.u32 4294901760, %v853_v36  ;;  %v856_v50 = vsel %vm310_vm0, %v819_v38, 0  ;;  %v822_v52 = vld [vmem:[%s4732_s13 + $0x38] sm:$0xff]  ;;  %3924 = vmatprep.subr.bf16.mxu0 %v4595_v3  ;;  %v823_v61 = vld [vmem:[%s4732_s13 + $0x40] sm:$0xff] }
  0x20   : > { %v4772_v39 = vsub.f32 %v4745_v24, %v5618_v30  ;;  %v4777_v40 = vsub.f32 %v4748_v25, %v5617_v31  ;;  %v859_v59 = vsel %vm310_vm0, %v820_v46, 0  ;;  %v904_v60 = vand.u32 4294901760, %v856_v50  ;;  %v824_v2 = vld [vmem:[%s4732_s13 + $0x48] sm:$0xff]  ;;  %v825_v4 = vld [vmem:[%s4732_s13 + $0x50] sm:$0xff]  ;;  %v826_v23 = vld [vmem:[%s4732_s13 + $0x58] sm:$0xff]  ;;  %s5186_s16 = smov 0  }
  0x21   : > { %v4780_v41 = vsub.f32 %v312_v26, %v4758_v32  ;;  %v4791_v53 = vpack.c.bf16 %v901_v45, %v898_v44  ;;  %v4793_v54 = vsub.f32 %v850_v35, %v898_v44  ;;  %v4795_v55 = vsub.f32 %v853_v36, %v901_v45  ;;  %v827_v26 = vld [vmem:[%s4732_s13 + $0x60] sm:$0xff]  ;;  %v828_v38 = vld [vmem:[%s4732_s13 + $0x68] sm:$0xff] }
  0x22   : > { %v4018_v47 = vpack.c.bf16 %v4777_v40, %v4772_v39  ;;  %v907_v63 = vand.u32 4294901760, %v859_v59  ;;  %v862_v0 = vsel %vm310_vm0, %v821_v51, 0  ;;  %v865_v1 = vsel %vm310_vm0, %v822_v52, 0 }
  0x23   : > { %v5616_v48 = vand.u32 4294901760, %v4780_v41  ;;  %v4022_v62 = vpack.c.bf16 %v4795_v55, %v4793_v54  ;;  %v4820_v8 = vsub.f32 %v856_v50, %v904_v60  ;;  %v910_v9 = vand.u32 4294901760, %v862_v0 }
  0x24   : > { %4019 = vmatprep.subr.bf16.mxu1 %v4018_v47  ;;  %v4825_v14 = vpack.c.bf16 %v907_v63, %v904_v60  ;;  %v4827_v16 = vsub.f32 %v859_v59, %v907_v63  ;;  %v913_v21 = vand.u32 4294901760, %v865_v1  ;;  %v868_v22 = vsel %vm310_vm0, %v823_v61, 0 }
  0x25   : > { %v398_v57 = vsub.f32 %v4780_v41, %v5616_v48  ;;  %4021 = vmatpush3.bf16.xpose.msra.mxu1 %v4018_v47  ;;  %v871_v27 = vsel %vm310_vm0, %v824_v2, 0  ;;  %v4834_v28 = vsel %vm310_vm0, %v825_v4, 0  ;;  %v832_v29 = vsel %vm310_vm0, %v811_v5, 0 }
  0x26   : > { %4023 = vmatprep.subr.bf16.mxu1 %v4022_v62  ;;  %v4837_v33 = vpack.c.bf16 %v913_v21, %v910_v9  ;;  %v916_v35 = vand.u32 4294901760, %v868_v22  ;;  %v919_v36 = vand.u32 4294901760, %v871_v27  ;;  %v424_v44 = vand.u32 4294901760, %v4800_v56  ;;  %v829_v56 = vld [vmem:[%s4732_s13 + $0x70] sm:$0xff] }
  0x27   : > { %v399_v6 = vand.u32 4294901760, %v398_v57  ;;  %v4026_v45 = vpack.c.bf16 %v4827_v16, %v4820_v8  ;;  %v4845_v46 = vsel %vm310_vm0, %v826_v23, 0  ;;  %v4848_v47 = vsel %vm310_vm0, %v827_v26, 0  ;;  %v830_v57 = vld [vmem:[%s4732_s13 + $0x78] sm:$0xff] }
  0x28   : > { %v4852_v50 = vpack.c.bf16 %v919_v36, %v916_v35  ;;  %v922_v51 = vand.u32 4294901760, %v4834_v28  ;;  %v925_v52 = vand.u32 4294901760, %v4845_v46  ;;  %v4860_v59 = vsel %vm310_vm0, %v828_v38, 0 }
  0x29   : > { %3357 = vmatmul.mubr.f32.vlgmr.msra.gmra.mrb[0].mxu0 %v399_v6  ;;  %v4862_v60 = vand.u32 4294901760, %v832_v29  ;;  %v928_v61 = vand.u32 4294901760, %v4848_v47  ;;  %v931_v63 = vand.u32 4294901760, %v4860_v59  ;;  %v4868_v2 = vand.u32 4294901760, %v835_v43 }
  0x2a   : > { %3926 = vmatpush3.bf16.xpose.msra.mxu0 %v3925_v7  ;;  %3367 = vmatprep.mubr.msk.f32.mxu0 %vm4596_vm1, %v4597_v15  ;;  %v4864_v58 = vpack.c.bf16 %v925_v52, %v922_v51  ;;  %v4870_v4 = vsub.f32 %v862_v0, %v910_v9  ;;  %v4872_v5 = vsub.f32 %v865_v1, %v913_v21  ;;  %v4875_v6 = vsel %vm310_vm0, %v829_v56, 0 }
  0x2b   : > { %3927 = vmatprep.subr.bf16.mxu0 %v4595_v3  ;;  %v4878_v7 = vsel %vm310_vm0, %v830_v57, 0  ;;  %v4884_v10 = vpack.c.bf16 %v931_v63, %v928_v61  ;;  %v5623_v23 = vand.u32 4294901760, %v4875_v6  ;;  %v4889_v1 = vsub.f32 %v832_v29, %v4862_v60 }
  0x2c   : > { %v5622_v0 = vand.u32 4294901760, %v4878_v7  ;;  %v4030_v9 = vpack.c.bf16 %v4872_v5, %v4870_v4  ;;  %v4901_v26 = vsub.f32 %v835_v43, %v4868_v2  ;;  %v1015_v38 = vand.u32 4294901760, %v4772_v39 }
  0x2d   : > { %4025 = vmatpush3.bf16.xpose.msra.mxu1 %v4022_v62  ;;  %v3928_v62 = vpack.c.bf16 %v431_v49, %v424_v44  ;;  %3522 = vmatprep.mubr.f32.mxu1 %v4889_v1  ;;  %v1022_v29 = vand.u32 4294901760, %v4777_v40  ;;  %v4906_v44 = vsub.f32 %v868_v22, %v916_v35  ;;  %v1029_v56 = vand.u32 4294901760, %v4793_v54 }
  0x2e   : > { %4027 = vmatprep.subr.bf16.mxu1 %v4026_v45  ;;  %v4897_v21 = vpack.c.bf16 %v5622_v0, %v5623_v23  ;;  %v5621_v49 = vand.u32 4294901760, %v4901_v26  ;;  %v1036_v57 = vand.u32 4294901760, %v4795_v55  ;;  %v4911_v42 = vsub.f32 %v871_v27, %v919_v36 }
  0x2f   : > { %v4913_v43 = vpack.c.bf16 %v1022_v29, %v1015_v38  ;;  %v1050_v37 = vand.u32 4294901760, %v4827_v16  ;;  %v1016_v22 = vsub.f32 %v4772_v39, %v1015_v38  ;;  %v1023_v35 = vsub.f32 %v4777_v40, %v1022_v29 }
  0x30   : > { %v4917_v48 = vpack.c.bf16 %v1036_v57, %v1029_v56  ;;  %v4924_v31 = vsub.f32 %v4901_v26, %v5621_v49  ;;  %v3931_v27 = vpack.c.bf16 %v4722_v13, %v4720_v12  ;;  %v1057_v19 = vand.u32 4294901760, %v4870_v4 }
  0x31   : > { %v1024_v30 = vand.u32 4294901760, %v1023_v35  ;;  %v1064_v18 = vand.u32 4294901760, %v4872_v5  ;;  %v4034_v39 = vpack.c.bf16 %v4911_v42, %v4906_v44  ;;  %v1030_v29 = vsub.f32 %v4793_v54, %v1029_v56 }
  0x32   : > { %3929 = vmatpush3.bf16.xpose.msra.mxu0 %v3928_v62  ;;  %v1043_v62 = vand.u32 4294901760, %v4820_v8  ;;  %v4945_v35 = vsub.f32 %v4834_v28, %v922_v51  ;;  %v1071_v0 = vand.u32 4294901760, %v4906_v44  ;;  %v4966_v51 = vsub.f32 %v4848_v47, %v928_v61 }
  0x33   : > { %3930 = vmatprep.subr.bf16.mxu0 %v4595_v3  ;;  %v4939_v38 = vpack.c.bf16 %v1064_v18, %v1057_v19  ;;  %v1058_v47 = vsub.f32 %v4870_v4, %v1057_v19  ;;  %v5626_v61 = vand.u32 4294901760, %v4875_v6 }
  0x34   : > { %v4928_v36 = vpack.c.bf16 %v1050_v37, %v1043_v62  ;;  %v1044_v28 = vsub.f32 %v4820_v8, %v1043_v62  ;;  %v5627_v62 = vand.u32 4294901760, %v4878_v7 }
  0x35   : > { %4029 = vmatpush3.bf16.xpose.msra.mxu1 %v4026_v45  ;;  %v1017_v45 = vand.u32 4294901760, %v1016_v22  ;;  %v1037_v22 = vsub.f32 %v4795_v55, %v1036_v57  ;;  %v1085_v57 = vand.u32 4294901760, %v4945_v35 }
  0x36   : > { %4031 = vmatprep.subr.bf16.mxu1 %v4030_v9 }
  0x37   : > { %v4935_v40 = vpack.c.bf16 %v1024_v30, %v1017_v45  ;;  %v4948_v30 = vsub.f32 %v4845_v46, %v925_v52  ;;  %v1031_v45 = vand.u32 4294901760, %v1030_v29  ;;  %v1038_v49 = vand.u32 4294901760, %v1037_v22 }
  0x38   : > { %v1051_v46 = vsub.f32 %v4827_v16, %v1050_v37  ;;  %v4971_v52 = vsub.f32 %v4860_v59, %v931_v63  ;;  %v1065_v59 = vsub.f32 %v4872_v5, %v1064_v18  ;;  %v1112_v63 = vsub.f32 %v4875_v6, %v5626_v61 }
  0x39   : > { %3368 = vmatmul.mubr.f32.vlgmr.msra.gmra.mrb[0].mxu0 %v4758_v32  ;;  %v4954_v23 = vpack.c.bf16 %v1038_v49, %v1031_v45  ;;  %v4038_v54 = vpack.c.bf16 %v4948_v30, %v4945_v35  ;;  %v1045_v49 = vand.u32 4294901760, %v1044_v28  ;;  %v1119_v29 = vsub.f32 %v4878_v7, %v5627_v62 }
  0x3a   : > { %3932 = vmatpush3.bf16.xpose.msra.mxu0 %v3931_v27  ;;  %3378 = vmatprep.mubr.msk.f32.mxu0 %vm4596_vm1, %v4597_v15  ;;  %v3934_v27 = vpack.c.bf16 %v4740_v20, %v4727_v17  ;;  %v1052_v56 = vand.u32 4294901760, %v1051_v46  ;;  %v4042_v37 = vpack.c.bf16 %v4971_v52, %v4966_v51  ;;  %v1059_v22 = vand.u32 4294901760, %v1058_v47 }
  0x3b   : > { %3933 = vmatprep.subr.bf16.mxu0 %v4595_v3  ;;  %v1099_v45 = vand.u32 4294901760, %v4966_v51  ;;  %v1106_v28 = vand.u32 4294901760, %v4971_v52  ;;  %v4046_v19 = vpack.c.bf16 %v1119_v29, %v1112_v63  ;;  %v1072_v18 = vsub.f32 %v4906_v44, %v1071_v0 }
  0x3c   : > { %v4975_v8 = vpack.c.bf16 %v1052_v56, %v1045_v49  ;;  %v5628_v6 = vand.u32 4294901760, %v4720_v12  ;;  %v5629_v7 = vand.u32 4294901760, %v4722_v13  ;;  %v813_v49 = vld [vmem:[%s5610_s3 + $0x10] sm:$0xff]  ;;  %v1120_v61 = vand.u32 4294901760, %v1119_v29 }
  0x3d   : > { %4033 = vmatpush3.bf16.xpose.msra.mxu1 %v4030_v9  ;;  %v1078_v9 = vand.u32 4294901760, %v4911_v42  ;;  %v4998_v4 = vpack.c.bf16 %v1106_v28, %v1099_v45  ;;  %v1073_v56 = vand.u32 4294901760, %v1072_v18  ;;  %v5632_v12 = vand.u32 4294901760, %v4780_v41 }
  0x3e   : > { %4035 = vmatprep.subr.bf16.mxu1 %v4034_v39  ;;  %v3943_v46 = vpack.c.bf16 %v5629_v7, %v5628_v6  ;;  %v838_v13 = vsel %vm310_vm0, %v813_v49, 0  ;;  %v5634_v18 = vand.u32 4294901760, %v4740_v20  ;;  %v1100_v20 = vsub.f32 %v4966_v51, %v1099_v45 }
  0x3f   : > { %v4958_v55 = vpack.c.bf16 %v1078_v9, %v1071_v0  ;;  %v1079_v5 = vsub.f32 %v4911_v42, %v1078_v9  ;;  %v5630_v0 = vand.u32 4294901760, %v4745_v24  ;;  %v5631_v42 = vand.u32 4294901760, %v4748_v25  ;;  %v814_v9 = vld [vmem:[%s5610_s3 + $0x18] sm:$0xff] }
  0x40   : > { %v5030_v24 = vand.u32 4294901760, %v838_v13  ;;  %v841_v25 = vsel %vm310_vm0, %v814_v9, 0 }
  0x41   : > { %v1080_v47 = vand.u32 4294901760, %v1079_v5  ;;  %v5017_v44 = vpack.c.bf16 %v5631_v42, %v5630_v0 }
  0x42   : > { %3935 = vmatpush3.bf16.xpose.msra.mxu0 %v3934_v27  ;;  %v1066_v27 = vand.u32 4294901760, %v1065_v59  ;;  %v1113_v59 = vand.u32 4294901760, %v1112_v63 }
  0x43   : > { %3936 = vmatprep.subr.bf16.mxu0 %v4595_v3  ;;  %v5011_v62 = vpack.c.bf16 %v1080_v47, %v1073_v56 }
  0x44   : > { %v1114_v51 = vsub.f32 %v1112_v63, %v1113_v59 }
  0x45   : > { %4037 = vmatpush3.bf16.xpose.msra.mxu1 %v4034_v39  ;;  %v1092_v39 = vand.u32 4294901760, %v4948_v30 }
  0x46   : > { %4039 = vmatprep.subr.bf16.mxu1 %v4038_v54  ;;  %v1115_v45 = vand.u32 4294901760, %v1114_v51 }
  0x47   : > { %v4980_v16 = vpack.c.bf16 %v1092_v39, %v1085_v57 }
  0x49   : > { %3379 = vmatmul.mubr.f32.vlgmr.msra.gmra.mrb[0].mxu0 %v4780_v41  ;;  %v1086_v41 = vsub.f32 %v4945_v35, %v1085_v57  ;;  %v1101_v57 = vand.u32 4294901760, %v1100_v20 }
  0x4a   : > { %3938 = vmatpush3.bf16.xpose.msra.mxu0 %v4718_v11  ;;  %3389 = vmatprep.mubr.msk.f32.mxu0 %vm4596_vm1, %v4597_v15 }
  0x4b   : > { %3939 = vmatprep.subr.bf16.mxu0 %v4595_v3  ;;  %v1087_v6 = vand.u32 4294901760, %v1086_v41 }
  0x4d   : > { %4041 = vmatpush3.bf16.xpose.msra.mxu1 %v4038_v54  ;;  %v4996_v54 = vpack.c.bf16 %v1066_v27, %v1059_v22  ;;  %v1093_v22 = vsub.f32 %v4948_v30, %v1092_v39  ;;  %v5633_v27 = vand.u32 4294901760, %v4727_v17  ;;  %v974_v17 = vand.u32 4294901760, %v4889_v1 }
  0x4e   : > { %4043 = vmatprep.subr.bf16.mxu1 %v4042_v37  ;;  %v1107_v30 = vsub.f32 %v4971_v52, %v1106_v28  ;;  %v1121_v52 = vsub.f32 %v1119_v29, %v1120_v61  ;;  %v5184_v29 = vmov 0.0  }
  0x4f   : > { %v3946_v5 = vpack.c.bf16 %v5634_v18, %v5633_v27  ;;  %v1094_v7 = vand.u32 4294901760, %v1093_v22 }
  0x50   : > { %v1108_v39 = vand.u32 4294901760, %v1107_v30  ;;  %v1122_v28 = vand.u32 4294901760, %v1121_v52 }
  0x51   : > { %v5045_v49 = vpack.c.bf16 %v1094_v7, %v1087_v6 }
  0x52   : > { %3941 = vmatpush3.bf16.xpose.msra.mxu0 %v4763_v34  ;;  %v5056_v56 = vpack.c.bf16 %v1108_v39, %v1101_v57  ;;  %v5066_v42 = vpack.c.bf16 %v1122_v28, %v1115_v45 }
  0x53   : > { %3942 = vmatprep.subr.bf16.mxu0 %v4595_v3 }
  0x55   : > { %4045 = vmatpush3.bf16.xpose.msra.mxu1 %v4042_v37  ;;  %v5025_v37 = vpack.c.bf16 %v1120_v61, %v1113_v59 }
  0x56   : > { %4047 = vmatprep.subr.bf16.mxu1 %v4046_v19 }
  0x59   : > { %3390 = vmatmul.mubr.f32.vlgmr.msra.gmra.mrb[0].mxu0 %v5632_v12  ;;  %v975_v12 = vsub.f32 %v4889_v1, %v974_v17 }
  0x5a   : > { %3944 = vmatpush3.bf16.xpose.msra.mxu0 %v3943_v46  ;;  %3400 = vmatprep.mubr.msk.f32.mxu0 %vm4596_vm1, %v4597_v15  ;;  %v5040_v46 = vand.u32 4294901760, %v841_v25 }
  0x5b   : > { %3945 = vmatprep.subr.bf16.mxu0 %v4595_v3  ;;  %v976_v63 = vand.u32 4294901760, %v975_v12 }
  0x5c   : > { %v1003_v35 = vsub.f32 %v841_v25, %v5040_v46 }
  0x5d   : > { %4049 = vmatpush3.bf16.xpose.msra.mxu1 %v4046_v19  ;;  %v5043_v19 = vsub.f32 %v838_v13, %v5030_v24 }
  0x5e   : > { %4051 = vmatprep.subr.bf16.mxu1 %v5017_v44  ;;  %v1004_v0 = vand.u32 4294901760, %v1003_v35 }
  0x5f   : > { %v994_v47 = vand.u32 4294901760, %v5043_v19 }
  0x60   : > { %v1005_v13 = vsub.f32 %v1003_v35, %v1004_v0 }
  0x62   : > { %3947 = vmatpush3.bf16.xpose.msra.mxu0 %v3946_v5 }
  0x63   : > { %3948 = vmatprep.subr.bf16.mxu0 %v4595_v3 }
  0x64   : > { %3523 = vmatmul.mubr.f32.vlgmr.msra.gmra.mrb[0].mxu1 %v4901_v26 }
  0x65   : > { %4053 = vmatpush3.bf16.xpose.msra.mxu1 %v5017_v44  ;;  %3525 = vmatprep.mubr.f32.mxu1 %v5043_v19 }
  0x66   : > { %4055 = vmatprep.subr.bf16.mxu1 %v4791_v53 }
  0x68   : > { %3526 = vmatmul.mubr.f32.gmra.mrb[2].mxu1 %v1003_v35 }
  0x69   : > { %3560 = vmatprep.mubr.f32.mxu1 %v974_v17  ;;  %3401 = vmatmul.mubr.f32.vlgmr.msra.gmra.mrb[0].mxu0 %v4758_v32 }
  0x6a   : > { %3950 = vmatpush3.bf16.xpose.msra.mxu0 %v4718_v11  ;;  %3411 = vmatprep.mubr.msk.f32.mxu0 %vm4596_vm1, %v4597_v15  ;;  %v995_v11 = vsub.f32 %v5043_v19, %v994_v47 }
  0x6b   : > { %3951 = vmatprep.subr.bf16.mxu0 %v4595_v3 }
  0x6c   : > { %v996_v1 = vand.u32 4294901760, %v995_v11 }
  0x6d   : > { %4057 = vmatpush3.bf16.xpose.msra.mxu1 %v4791_v53 }
  0x6e   : > { %4059 = vmatprep.subr.bf16.mxu1 %v4825_v14 }
  0x72   : > { %3953 = vmatpush3.bf16.xpose.msra.mxu0 %v4763_v34  ;;  %v986_v34 = vand.u32 4294901760, %v4924_v31 }
  0x73   : > { %3955 = vmatprep.subr.bf16.mxu0 %v5017_v44 }
  0x75   : > { %4061 = vmatpush3.bf16.xpose.msra.mxu1 %v4825_v14 }
  0x76   : > { %4063 = vmatprep.subr.bf16.mxu1 %v4837_v33 }
  0x79   : > { %3412 = vmatmul.mubr.f32.vlgmr.msra.gmra.mrb[0].mxu0 %v4758_v32  ;;  %v5635_v32 = vand.u32 4294901760, %v4901_v26  ;;  %v1006_v26 = vand.u32 4294901760, %v1005_v13 }
  0x7a   : > { %3957 = vmatpush3.bf16.xpose.msra.mxu0 %v5017_v44  ;;  %3446 = vmatprep.mubr.f32.mxu0 %v976_v63 }
  0x7b   : > { %3959 = vmatprep.subr.bf16.mxu0 %v4791_v53 }
  0x7d   : > { %4065 = vmatpush3.bf16.xpose.msra.mxu1 %v4837_v33 }
  0x7e   : > { %4067 = vmatprep.subr.bf16.mxu1 %v4852_v50 }
  0x82   : > { %3961 = vmatpush3.bf16.xpose.msra.mxu0 %v4791_v53 }
  0x83   : > { %3963 = vmatprep.subr.bf16.mxu0 %v4825_v14 }
  0x85   : > { %4069 = vmatpush3.bf16.xpose.msra.mxu1 %v4852_v50 }
  0x86   : > { %4071 = vmatprep.subr.bf16.mxu1 %v4864_v58 }
  0x8a   : > { %3965 = vmatpush3.bf16.xpose.msra.mxu0 %v4825_v14 }
  0x8b   : > { %3967 = vmatprep.subr.bf16.mxu0 %v4837_v33 }
  0x8d   : > { %4073 = vmatpush3.bf16.xpose.msra.mxu1 %v4864_v58 }
  0x8e   : > { %4075 = vmatprep.subr.bf16.mxu1 %v4884_v10 }
  0x92   : > { %3969 = vmatpush3.bf16.xpose.msra.mxu0 %v4837_v33 }
  0x93   : > { %3971 = vmatprep.subr.bf16.mxu0 %v4852_v50 }
  0x95   : > { %4077 = vmatpush3.bf16.xpose.msra.mxu1 %v4884_v10 }
  0x96   : > { %4079 = vmatprep.subr.bf16.mxu1 %v4897_v21 }
  0x9a   : > { %3973 = vmatpush3.bf16.xpose.msra.mxu0 %v4852_v50 }
  0x9b   : > { %3975 = vmatprep.subr.bf16.mxu0 %v4864_v58 }
  0x9d   : > { %4081 = vmatpush3.bf16.xpose.msra.mxu1 %v4897_v21 }
  0x9e   : > { %4083 = vmatprep.subr.bf16.mxu1 %v4913_v43 }
  0xa2   : > { %3977 = vmatpush3.bf16.xpose.msra.mxu0 %v4864_v58 }
  0xa3   : > { %3979 = vmatprep.subr.bf16.mxu0 %v4884_v10 }
  0xa4   : > { %3561 = vmatmul.mubr.f32.vlgmr.msra.gmra.mrb[0].mxu1 %v5635_v32 }
  0xa5   : > { %4085 = vmatpush3.bf16.xpose.msra.mxu1 %v4913_v43  ;;  %3563 = vmatprep.mubr.f32.mxu1 %v994_v47 }
  0xa6   : > { %4087 = vmatprep.subr.bf16.mxu1 %v4917_v48 }
  0xa8   : > { %3564 = vmatmul.mubr.f32.gmra.mrb[2].mxu1 %v1004_v0 }
  0xa9   : > { %3598 = vmatprep.mubr.f32.mxu1 %v4862_v60 }
  0xaa   : > { %3981 = vmatpush3.bf16.xpose.msra.mxu0 %v4884_v10 }
  0xab   : > { %3983 = vmatprep.subr.bf16.mxu0 %v4897_v21 }
  0xad   : > { %4089 = vmatpush3.bf16.xpose.msra.mxu1 %v4917_v48 }
  0xae   : > { %4091 = vmatprep.subr.bf16.mxu1 %v4928_v36 }
  0xb2   : > { %3985 = vmatpush3.bf16.xpose.msra.mxu0 %v4897_v21 }
  0xb3   : > { %3987 = vmatprep.subr.bf16.mxu0 %v4935_v40 }
  0xb5   : > { %4093 = vmatpush3.bf16.xpose.msra.mxu1 %v4928_v36 }
  0xb6   : > { %4095 = vmatprep.subr.bf16.mxu1 %v4939_v38 }
  0xb9   : > { %3447 = vmatmul.mubr.f32.vlgmr.msra.gmra.mrb[2].mxu0 %v986_v34 }
  0xba   : > { %3989 = vmatpush3.bf16.xpose.msra.mxu0 %v4935_v40  ;;  %3449 = vmatprep.mubr.f32.mxu0 %v996_v1 }
  0xbb   : > { %3991 = vmatprep.subr.bf16.mxu0 %v4954_v23 }
  0xbd   : > { %4097 = vmatpush3.bf16.xpose.msra.mxu1 %v4939_v38  ;;  %3450 = vmatmul.mubr.f32.gmra.mrb[4].mxu0 %v1006_v26 }
  0xbe   : > { %4099 = vmatprep.subr.bf16.mxu1 %v4958_v55  ;;  %3484 = vmatprep.mubr.f32.mxu0 %v4862_v60 }
  0xc2   : > { %3993 = vmatpush3.bf16.xpose.msra.mxu0 %v4954_v23 }
  0xc3   : > { %3995 = vmatprep.subr.bf16.mxu0 %v4975_v8 }
  0xc5   : > { %4101 = vmatpush3.bf16.xpose.msra.mxu1 %v4958_v55 }
  0xc6   : > { %4103 = vmatprep.subr.bf16.mxu1 %v4980_v16 }
  0xca   : > { %3997 = vmatpush3.bf16.xpose.msra.mxu0 %v4975_v8 }
  0xcb   : > { %3999 = vmatprep.subr.bf16.mxu0 %v4996_v54 }
  0xcd   : > { %4105 = vmatpush3.bf16.xpose.msra.mxu1 %v4980_v16 }
  0xce   : > { %4107 = vmatprep.subr.bf16.mxu1 %v4998_v4 }
  0xd2   : > { %4001 = vmatpush3.bf16.xpose.msra.mxu0 %v4996_v54 }
  0xd3   : > { %4003 = vmatprep.subr.bf16.mxu0 %v5011_v62 }
  0xd5   : > { %4109 = vmatpush3.bf16.xpose.msra.mxu1 %v4998_v4 }
  0xd6   : > { %4111 = vmatprep.subr.bf16.mxu1 %v5025_v37 }
  0xda   : > { %4005 = vmatpush3.bf16.xpose.msra.mxu0 %v5011_v62 }
  0xdb   : > { %4007 = vmatprep.subr.bf16.mxu0 %v5045_v49 }
  0xdd   : > { %4113 = vmatpush3.bf16.xpose.msra.mxu1 %v5025_v37 }
  0xde   : > { %4115 = vmatprep.subr.bf16.mxu1 %v5017_v44 }
  0xe2   : > { %4009 = vmatpush3.bf16.xpose.msra.mxu0 %v5045_v49 }
  0xe3   : > { %4011 = vmatprep.subr.bf16.mxu0 %v5056_v56 }
  0xe4   : > { %3599 = vmatmul.mubr.f32.vlgmr.msra.gmra.mrb[0].mxu1 %v4868_v2 }
  0xe5   : > { %4117 = vmatpush3.bf16.xpose.msra.mxu1 %v5017_v44  ;;  %3601 = vmatprep.mubr.f32.mxu1 %v5030_v24 }
  0xe6   : > { %4119 = vmatprep.subr.bf16.mxu1 %v4791_v53 }
  0xe8   : > { %3602 = vmatmul.mubr.f32.gmra.mrb[2].mxu1 %v5040_v46 }
  0xe9   : > { %3636 = vmatprep.mubr.f32.mxu1 %v4862_v60 }
  0xea   : > { %4013 = vmatpush3.bf16.xpose.msra.mxu0 %v5056_v56 }
  0xeb   : > { %4015 = vmatprep.subr.bf16.mxu0 %v5066_v42 }
  0xed   : > { %4121 = vmatpush3.bf16.xpose.msra.mxu1 %v4791_v53  ;;  %v1665_v53 = vlaneseq }
  0xee   : > { %4123 = vmatprep.subr.bf16.mxu1 %v4825_v14 }
  0xf2   : > { %4017 = vmatpush3.bf16.xpose.msra.mxu0 %v5066_v42 }
  0xf5   : > { %4125 = vmatpush3.bf16.xpose.msra.mxu1 %v4825_v14  ;;  %v5165_v14 = vshrl.u32 %v1665_v53, 7 }
  0xf6   : > { %4127 = vmatprep.subr.bf16.mxu1 %v4837_v33 }
  0xf7   : > { %v5174_v60 = vadd.s32 24, %v5165_v14 }
  0xf9   : > { %3485 = vmatmul.mubr.f32.vlgmr.msra.gmra.mrb[2].mxu0 %v4868_v2 }
  0xfa   : > { %3487 = vmatprep.mubr.f32.mxu0 %v5030_v24 }
  0xfd   : > { %4129 = vmatpush3.bf16.xpose.msra.mxu1 %v4837_v33  ;;  %3488 = vmatmul.mubr.f32.gmra.mrb[4].mxu0 %v5040_v46  ;;  %v5168_v33 = vadd.s32 8, %v5165_v14 }
  0xfe   : > { %4131 = vmatprep.subr.bf16.mxu1 %v4852_v50 }
 0x105   : > { %4133 = vmatpush3.bf16.xpose.msra.mxu1 %v4852_v50  ;;  %v5171_v50 = vadd.s32 16, %v5165_v14 }
 0x106   : > { %4135 = vmatprep.subr.bf16.mxu1 %v4864_v58 }
 0x10d   : > { %4137 = vmatpush3.bf16.xpose.msra.mxu1 %v4864_v58 }
 0x10e   : > { %4139 = vmatprep.subr.bf16.mxu1 %v4884_v10 }
 0x115   : > { %4141 = vmatpush3.bf16.xpose.msra.mxu1 %v4884_v10 }
 0x116   : > { %4143 = vmatprep.subr.bf16.mxu1 %v4897_v21 }
 0x11d   : > { %4145 = vmatpush3.bf16.xpose.msra.mxu1 %v4897_v21 }
 0x124   : > { %3637 = vmatmul.mubr.f32.vlgmr.msra.gmra.mrb[0].mxu1 %v4868_v2 }
 0x125   : > { %3639 = vmatprep.mubr.f32.mxu1 %v5030_v24 }
 0x128   : > { %3640 = vmatmul.mubr.f32.gmra.mrb[2].mxu1 %v5040_v46 }
 0x14c   : > { %v5162_v31 = vpop.f32.mrb[0].mxu0 }
 0x14d   : > { %v3413_v48 = vpop.f32.mrb[1].mxu0 }
 0x1cc   : > { %v3486_v58 = vpop.f32.mrb[2].mxu0 }
 0x1cd   : > { %v1159_v2 = vpop.f32.mrb[3].mxu0 }
 0x1d0   : > { %v3489_v10 = vpop.f32.mrb[4].mxu0 }
 0x1d1   : > { %v1171_v23 = vpop.f32.mrb[5].mxu0 }
 0x1f7   : > { %v3638_v21 = vpop.f32.mrb[0].mxu1 }
 0x1f8   : > { %v4326_v43 = vadd.f32 %v3638_v21, %v3486_v58  ;;  %v1639_v36 = vpop.f32.mrb[1].mxu1 }
 0x1f9   : > { %v4327_v40 = vadd.f32 %v1639_v36, %v1159_v2 }
 0x1fa   : > { %1662 = vst [vmem:[#allocation2 + $0x8] sm:$0xff] %v4326_v43 }
 0x1fb   : > { %1661 = vst [vmem:[#allocation2] sm:$0xff] %v4327_v40  ;;  %v3641_v38 = vpop.f32.mrb[2].mxu1 }
 0x1fc   : > { %v4328_v55 = vadd.f32 %v3641_v38, %v3489_v10  ;;  %v1651_v8 = vpop.f32.mrb[3].mxu1 }
 0x1fd   : > { %v4329_v16 = vadd.f32 %v1651_v8, %v1171_v23 }
 0x1fe   : > { %1664 = vst [vmem:[#allocation2 + $0x18] sm:$0xff] %v4328_v55 }
 0x1ff   : > { %1663 = vst [vmem:[#allocation2 + $0x10] sm:$0xff] %v4329_v16 }
 0x200 LB: >> { %v4598_v54 = vmov 0.0|0.0   ;;  %vm1690_vm2 = vcmask 261120   ;;  %v1677_v4 = vstv %s4593_s16  ;;  %vm4599_vm3 = vmmov 0   ;;  %s2181_s19 = scalar_lea.vmem %s5611_s4, %s4593_s16  ;;  %s2179_s20 = scalar_lea.vmem [#allocation2], %s4593_s16  ;;  %s4593_s16 = sphi %s5186_s16, %s1675_s16   ;;  %v4589_v29 = vphi %v5184_v29, %v5640_v29  }
 0x201   : >> { %4164 = vmatprep.subr.bf16.mxu0 %v4598_v54  ;;  %4146 = vmatprep.subr.bf16.mxu1 %v4598_v54  ;;  %v4600_v59 = vmov 0.0   ;;  %v1692_v61 = vsel %vm1690_vm2, %v5162_v31, 0  ;;  %vm1678_vm4 = vcmp.eq.s32.totalorder %v5165_v14, %v1677_v4  ;;  %vm1679_vm5 = vcmp.eq.s32.totalorder %v5168_v33, %v1677_v4  ;;  %v2182_v34 = vld [vmem:[%s2181_s19] sm:$0x1]  ;;  %s1675_s16 = sadd.s32 1, %s4593_s16  }
 0x202   : >> { %3683 = vmatprep.mubr.msk.f32.mxu0 %vm4599_vm3, %v4600_v59  ;;  %3650 = vmatprep.mubr.msk.f32.mxu1 %vm4599_vm3, %v4600_v59  ;;  %vm1680_vm6 = vcmp.eq.s32.totalorder %v5171_v50, %v1677_v4  ;;  %vm1681_vm7 = vcmp.eq.s32.totalorder %v5174_v60, %v1677_v4  ;;  %v3042_v62 = vsel %vm1678_vm4, 1.0, %v4600_v59  ;;  %v3043_v44 = vsel %vm1679_vm5, 1.0, %v4600_v59  ;;  %vm5208_vm8 = vmpackc.low %vm1679_vm5, %vm1678_vm4  ;;  %4374 = vpush %v2182_v34  ;;  %p1672_p12 = scmp.ge.s32.totalorder %s1675_s16, 32  }
 0x203   : >> { %v3044_v37 = vsel %vm1680_vm6, 1.0, %v4600_v59  ;;  %v3045_v24 = vsel %vm1681_vm7, 1.0, %v4600_v59  ;;  %v1775_v25 = vsub.f32 %v3042_v62, %v3042_v62  ;;  %v1782_v41 = vsub.f32 %v3043_v44, %v3043_v44  ;;  %vm5223_vm9 = vmpackc.low %vm1681_vm7, %vm1680_vm6  ;;  %v2214_v14 = vld [vmem:[%s4732_s13] sm:$0xff] (%p1672_p12)  ;;  %v2215_v33 = vld [vmem:[%s4732_s13 + $0x8] sm:$0xff] (%p1672_p12)  ;;  %s2906_s12 = sshll.u32 (%p1672_p12), %s5182_s15, 4  ;;  %s2878_s16 = scalar_lea.sflag (%p1672_p12), [#allocation6], %s4696_s11  ;;  %s2907_s12 = int_to_ptr.vmem [resolvable:$true] %s2906_s12 }
 0x204   : >> { %v4601_v22 = vmov 1.0|1.0   ;;  %v1789_v27 = vsub.f32 %v3044_v37, %v3044_v37  ;;  %v1763_v18 = vand.u32 4294901760, %v1692_v61  ;;  %v1796_v6 = vsub.f32 %v3045_v24, %v3045_v24  ;;  %v2216_v50 = vld [vmem:[%s4732_s13 + $0x10] sm:$0xff] (%p1672_p12)  ;;  %v2217_v8 = vld [vmem:[%s4732_s13 + $0x18] sm:$0xff] (%p1672_p12)  ;;  %s4467_s18 = scalar_lea.vmem (%p1672_p12), %s2907_s12, 128 }
 0x205   : >> { %4166 = vmatpush3.bf16.msk.msra.mxu0 %vm5208_vm8, %v4601_v22  ;;  %4148 = vmatpush3.bf16.msk.msra.mxu1 %vm5208_vm8, %v4601_v22  ;;  %v1776_v7 = vand.u32 4294901760, %v1775_v25  ;;  %v1783_v46 = vand.u32 4294901760, %v1782_v41  ;;  %v4159_v13 = vpack.c.bf16 %v1782_v41, %v1775_v25  ;;  %v4602_v32 = vmov 0   ;;  %v2220_v62 = vld [vmem:[%s4732_s13 + $0x30] sm:$0xff] (%p1672_p12)  ;;  %v2221_v44 = vld [vmem:[%s4732_s13 + $0x38] sm:$0xff] (%p1672_p12)  ;;  %p4468_p13 = scmp.ne.s32.totalorder (%p1672_p12), %s2907_s12, %s4467_s18  ;;  %s4603_s17 = smov (%p1672_p12), [#allocation5]  }
 0x206   : >> { %4167 = vmatprep.subr.bf16.mxu0 %v4598_v54  ;;  %4149 = vmatprep.subr.bf16.mxu1 %v4598_v54  ;;  %v1764_v19 = vsub.f32 %v1692_v61, %v1763_v18  ;;  %v1790_v49 = vand.u32 4294901760, %v1789_v27  ;;  %v1797_v35 = vand.u32 4294901760, %v1796_v6  ;;  %v4162_v63 = vpack.c.bf16 %v1796_v6, %v1789_v27  ;;  %v3058_v10 = vld [vmem:[%s2179_s20] ss:$0 sm:$0xff]  ;;  %v2228_v34 = vld [vmem:[%s4732_s13 + $0x70] sm:$0xff] (%p1672_p12)  ;;  %s4471_s19 = sshll.u32 (%p1672_p12), %s4603_s17, 4  ;;  %s4472_s19 = int_to_ptr.vmem [resolvable:$false] %s4471_s19 }
 0x207   : >> { %v1777_v17 = vsub.f32 %v1775_v25, %v1776_v7  ;;  %v1784_v20 = vsub.f32 %v1782_v41, %v1783_v46  ;;  %v4171_v57 = vpack.c.bf16 %v1783_v46, %v1776_v7  ;;  %4460 = vset.pattern.permute.xlu0 %v4602_v32  ;;  %v2201_v55 = vand.u32 (%p1672_p12), 127, %v1665_v53  ;;  %p4469_p0 = pnand (%p1672_p12), %p4468_p13, %p4680_p4  ;;  %s4473_s20 = scalar_lea.vmem (%p1672_p12), %s4472_s19, 256 }
 0x208   : >> { %v1765_v30 = vand.u32 4294901760, %v1764_v19  ;;  %v1791_v39 = vsub.f32 %v1789_v27, %v1790_v49  ;;  %v1798_v56 = vsub.f32 %v1796_v6, %v1797_v35  ;;  %v4174_v11 = vpack.c.bf16 %v1797_v35, %v1790_v49  ;;  %p4474_p2 = scmp.lt.s32.totalorder (%p1672_p12), %s2907_s12, %s4472_s19  ;;  %p4475_p3 = scmp.lt.s32.totalorder (%p1672_p12), %s4473_s20, %s4467_s18 }
 0x209   : >> { %4169 = vmatpush3.bf16.msk.msra.mxu0 %vm5223_vm9, %v4601_v22  ;;  %4151 = vmatpush3.bf16.msk.msra.mxu1 %vm5223_vm9, %v4601_v22  ;;  %v1778_v51 = vand.u32 4294901760, %v1777_v17  ;;  %v1785_v52 = vand.u32 4294901760, %v1784_v20  ;;  %vm2202_vm10 = vcmp.lt.s32.totalorder (%p1672_p12), %v2201_v55, 8  ;;  %v2231_v53 = vand.u32 (%p1672_p12), 4294901760, %v2214_v14  ;;  %p4470_p1 = pneg (%p1672_p12), %p4469_p0 }
 0x20a   : >> { %4170 = vmatprep.subr.bf16.mxu0 %v4598_v54  ;;  %4152 = vmatprep.subr.bf16.mxu1 %v4598_v54  ;;  %v1766_v45 = vsub.f32 %v1764_v19, %v1765_v30  ;;  %v1792_v28 = vand.u32 4294901760, %v1791_v39  ;;  %v1799_v47 = vand.u32 4294901760, %v1798_v56  ;;  %v2234_v60 = vand.u32 (%p1672_p12), 4294901760, %v2215_v33  ;;  %v2223_v39 = vld [vmem:[%s4732_s13 + $0x48] sm:$0xff] (%p1672_p12)  ;;  %p4476_p5 = por (%p1672_p12), %p4475_p3, %p4474_p2 }
 0x20b   : >> { %v4153_v42 = vpack.c.bf16 %v1785_v52, %v1778_v51  ;;  %v2237_v16 = vand.u32 (%p1672_p12), 4294901760, %v2216_v50  ;;  %v2240_v4 = vand.u32 (%p1672_p12), 4294901760, %v2217_v8  ;;  %v5280_v37 = vsub.f32 (%p1672_p12), %v2214_v14, %v2231_v53 }
 0x20c   : >> { %3684 = vmatmul.mubr.f32.vlgmr.msra.gmra.mrb[0].mxu0 %v1765_v30  ;;  %v1767_v0 = vand.u32 4294901760, %v1766_v45  ;;  %v4156_v12 = vpack.c.bf16 %v1799_v47, %v1792_v28  ;;  %v5278_v9 = vpack.c.bf16 (%p1672_p12), %v2234_v60, %v2231_v53  ;;  %v5282_v24 = vsub.f32 (%p1672_p12), %v2215_v33, %v2234_v60  ;;  %v2224_v45 = vld [vmem:[%s4732_s13 + $0x50] sm:$0xff] (%p1672_p12)  ;;  %v2225_v28 = vld [vmem:[%s4732_s13 + $0x58] sm:$0xff] (%p1672_p12)  ;;  %p4477_p6 = pnand (%p1672_p12), %p4476_p5, %p4470_p1 }
 0x20d   : >> { %4172 = vmatpush3.bf16.msra.mxu0 %v4171_v57  ;;  %3694 = vmatprep.mubr.msk.f32.mxu0 %vm4599_vm3, %v4600_v59  ;;  %v5284_v25 = vsub.f32 (%p1672_p12), %v2216_v50, %v2237_v16  ;;  %v5286_v41 = vsub.f32 (%p1672_p12), %v2217_v8, %v2240_v4  ;;  %v5292_v27 = vpack.c.bf16 (%p1672_p12), %v2240_v4, %v2237_v16  ;;  %v2249_v5 = vand.u32 (%p1672_p12), 4294901760, %v2220_v62  ;;  %v2222_v57 = vld [vmem:[%s4732_s13 + $0x40] sm:$0xff] (%p1672_p12) }
 0x20e   : >> { %4173 = vmatprep.subr.bf16.mxu0 %v4598_v54  ;;  %3651 = vmatmul.mubr.f32.vlgmr.msra.gmra.mrb[0].mxu1 %v1767_v0  ;;  %v2252_v6 = vand.u32 (%p1672_p12), 4294901760, %v2221_v44  ;;  %v2255_v56 = vand.u32 (%p1672_p12), 4294901760, %v2222_v57  ;;  %v2258_v51 = vand.u32 (%p1672_p12), 4294901760, %v2223_v39  ;;  %v2261_v47 = vand.u32 (%p1672_p12), 4294901760, %v2224_v45 }
 0x20f   : >> { %4154 = vmatpush3.bf16.msra.mxu1 %v4153_v42  ;;  %3661 = vmatprep.mubr.msk.f32.mxu1 %vm4599_vm3, %v4600_v59  ;;  %v5298_v7 = vsub.f32 (%p1672_p12), %v2220_v62, %v2249_v5  ;;  %v2264_v0 = vand.u32 (%p1672_p12), 4294901760, %v2225_v28  ;;  %v2324_v55 = vand.u32 (%p1672_p12), 4294901760, %v5280_v37  ;;  %v2338_v8 = vand.u32 (%p1672_p12), 4294901760, %v5284_v25 }
 0x210   : >> { %4155 = vmatprep.subr.bf16.mxu1 %v4598_v54  ;;  %v5300_v46 = vsub.f32 (%p1672_p12), %v2221_v44, %v2252_v6  ;;  %v5310_v49 = vpack.c.bf16 (%p1672_p12), %v2252_v6, %v2249_v5  ;;  %v5323_v52 = vpack.c.bf16 (%p1672_p12), %v2258_v51, %v2255_v56  ;;  %v2345_v16 = vand.u32 (%p1672_p12), 4294901760, %v5286_v41 }
 0x211   : >> { %4175 = vmatpush3.bf16.msra.mxu0 %v4174_v11  ;;  %v5331_v42 = vpack.c.bf16 (%p1672_p12), %v2264_v0, %v2261_v47  ;;  %v2226_v11 = vld [vmem:[%s4732_s13 + $0x60] sm:$0xff] (%p1672_p12)  ;;  %v2325_v33 = vsub.f32 (%p1672_p12), %v5280_v37, %v2324_v55  ;;  %v2339_v4 = vsub.f32 (%p1672_p12), %v5284_v25, %v2338_v8 }
 0x212   : >> { %4176 = vmatprep.subr.bf16.mxu0 %v4598_v54 }
 0x213   : >> { %4157 = vmatpush3.bf16.msra.mxu1 %v4156_v12  ;;  %v2227_v12 = vld [vmem:[%s4732_s13 + $0x68] sm:$0xff] (%p1672_p12)  ;;  %v2326_v53 = vand.u32 (%p1672_p12), 4294901760, %v2325_v33 }
 0x214   : >> { %3695 = vmatmul.mubr.f32.vlgmr.msra.gmra.mrb[0].mxu0 %v1763_v18  ;;  %4158 = vmatprep.subr.bf16.mxu1 %v4598_v54 }
 0x215   : >> { %4178 = vmatpush3.bf16.msk.msra.mxu0 %vm5208_vm8, %v4601_v22  ;;  %3705 = vmatprep.mubr.msk.f32.mxu0 %vm4599_vm3, %v4600_v59 }
 0x216   : >> { %4179 = vmatprep.subr.bf16.mxu0 %v4598_v54  ;;  %3662 = vmatmul.mubr.f32.vlgmr.msra.gmra.mrb[0].mxu1 %v1763_v18 }
 0x217   : >> { %4160 = vmatpush3.bf16.msra.mxu1 %v4159_v13  ;;  %3672 = vmatprep.mubr.msk.f32.mxu1 %vm4599_vm3, %v4600_v59  ;;  %v2267_v13 = vand.u32 (%p1672_p12), 4294901760, %v2226_v11 }
 0x218   : >> { %4161 = vmatprep.subr.bf16.mxu1 %v4598_v54  ;;  %v2219_v54 = vld [vmem:[%s4732_s13 + $0x28] sm:$0xff] (%p1672_p12) }
 0x219   : >> { %4181 = vmatpush3.bf16.msk.msra.mxu0 %vm5223_vm9, %v4601_v22  ;;  %v2246_v61 = vand.u32 (%p1672_p12), 4294901760, %v2219_v54 }
 0x21a   : > { %4254 = vmatprep.subr.bf16.mxu0 (%p1672_p12), %v4595_v3 }
 0x21b   : >> { %4163 = vmatpush3.bf16.msra.mxu1 %v4162_v63  ;;  %v2270_v63 = vand.u32 (%p1672_p12), 4294901760, %v2227_v12 }
 0x21c   : >> { %3706 = vmatmul.mubr.f32.vlgmr.msra.gmra.mrb[0].mxu0 %v1763_v18  ;;  %4182 = vmatprep.subr.bf16.mxu1 (%p1672_p12), %v4595_v3  ;;  %v5294_v18 = vsub.f32 (%p1672_p12), %v2219_v54, %v2246_v61  ;;  %v5379_v54 = vpack.c.bf16 (%p1672_p12), %v2345_v16, %v2338_v8 }
 0x21d   : > { %3845 = vmatprep.mubr.msk.f32.mxu0 (%p1672_p12), %vm4596_vm1, %v4597_v15  ;;  %4256 = vmatpush3.bf16.msra.mxu0 (%p1672_p12), %v5278_v9  ;;  %v5339_v32 = vpack.c.bf16 (%p1672_p12), %v2270_v63, %v2267_v13 }
 0x21e   : >> { %3673 = vmatmul.mubr.f32.vlgmr.msra.gmra.mrb[0].mxu1 %v1764_v19  ;;  %4257 = vmatprep.subr.bf16.mxu0 (%p1672_p12), %v4595_v3  ;;  %v2359_v5 = vand.u32 (%p1672_p12), 4294901760, %v5294_v18 }
 0x21f   : > { %3740 = vmatprep.mubr.msk.f32.mxu1 (%p1672_p12), %vm4596_vm1, %v4597_v15  ;;  %4184 = vmatpush3.bf16.msra.mxu1 (%p1672_p12), %v5278_v9 }
 0x220   : > { %4185 = vmatprep.subr.bf16.mxu1 (%p1672_p12), %v4595_v3 }
 0x221   : > { %4259 = vmatpush3.bf16.msra.mxu0 (%p1672_p12), %v5292_v27 }
 0x222   : > { %4260 = vmatprep.subr.bf16.mxu0 (%p1672_p12), %v4595_v3 }
 0x223   : > { %4187 = vmatpush3.bf16.msra.mxu1 (%p1672_p12), %v5292_v27 }
 0x224   : > { %4188 = vmatprep.subr.bf16.mxu1 (%p1672_p12), %v4595_v3 }
 0x233   : >> { %s4375_s27 = spop %4374 }
 0x234   : >> { %v2196_v43 = vstv %s4375_s27 }
 0x2ef   : >> { %v2175_v1 = vpop.f32.mrb[0].mxu0 }
 0x2f0   : >> { %v3707_v26 = vpop.f32.mrb[1].mxu0 }
 0x2f1   : >> { %v1940_v48 = vpop.f32.mrb[0].mxu1  ;;  %v2273_v26 = vand.u32 (%p1672_p12), 4294901760, %v2228_v34 }
 0x2f2   : >> { %v4356_v58 = vadd.f32 %v2175_v1, %v1940_v48  ;;  %v3674_v2 = vpop.f32.mrb[1].mxu1  ;;  %v2229_v1 = vld [vmem:[%s4732_s13 + $0x78] sm:$0xff] (%p1672_p12) }
 0x2f3   : > { %v2276_v48 = vand.u32 (%p1672_p12), 4294901760, %v2229_v1  ;;  %v5349_v2 = vsub.f32 (%p1672_p12), %v2223_v39, %v2258_v51  ;;  %v2373_v51 = vand.u32 (%p1672_p12), 4294901760, %v5300_v46 }
 0x2f4   : >> { %2185 = vperm.xlu0 %4460, %v4356_v58   ;;  %v5347_v58 = vsub.f32 (%p1672_p12), %v2222_v57, %v2255_v56  ;;  %v2366_v56 = vand.u32 (%p1672_p12), 4294901760, %v5298_v7 }
 0x373   : >> { %v2186_v23 = vpop.permute.xlu0 %2185 }
 0x374   : >> { %v2192_v21 = vadd.f32 %v3058_v10, %v2186_v23  ;;  %v5351_v10 = vsub.f32 (%p1672_p12), %v2224_v45, %v2261_v47  ;;  %v5353_v23 = vsub.f32 (%p1672_p12), %v2225_v28, %v2264_v0  ;;  %v5395_v28 = vpack.c.bf16 (%p1672_p12), %v2373_v51, %v2366_v56 }
 0x375   : > { %v2367_v47 = vsub.f32 (%p1672_p12), %v5298_v7, %v2366_v56  ;;  %v2374_v0 = vsub.f32 (%p1672_p12), %v5300_v46, %v2373_v51 }
 0x376   : >> { %4461 = vtanh.f32 %v2192_v21  ;;  %v5355_v21 = vsub.f32 (%p1672_p12), %v2226_v11, %v2267_v13  ;;  %v2380_v13 = vand.u32 (%p1672_p12), 4294901760, %v5347_v58  ;;  %v2394_v33 = vand.u32 (%p1672_p12), 4294901760, %v5351_v10 }
 0x377   : > { %v2368_v11 = vand.u32 (%p1672_p12), 4294901760, %v2367_v47 }
 0x378   : > { %v2395_v8 = vsub.f32 (%p1672_p12), %v5351_v10, %v2394_v33 }
 0x37f   : > { %1674 = sbr.rel (!%p1672_p12) target bundleno = 512 (0x200), region = 104 }
 0x380   : >> { %v4462_v36 = vpop.eup %4461 }
 0x381   : >> { %v2198_v40 = vmul.f32 %v4462_v36, %v2196_v43  ;;  %v5357_v43 = vsub.f32 (%p1672_p12), %v2227_v12, %v2270_v63  ;;  %v5359_v36 = vpack.c.bf16 (%p1672_p12), %v2276_v48, %v2273_v26  ;;  %v2375_v12 = vand.u32 (%p1672_p12), 4294901760, %v2374_v0 }
 0x382   : > { %v2387_v63 = vand.u32 (%p1672_p12), 4294901760, %v5349_v2 }
 0x383   : >> { %v2199_v38 = vadd.f32 %v4589_v29, %v2198_v40   ;;  %v5361_v40 = vsub.f32 (%p1672_p12), %v2228_v34, %v2273_v26  ;;  %v5401_v34 = vpack.c.bf16 (%p1672_p12), %v2375_v12, %v2368_v11  ;;  %v2381_v26 = vsub.f32 (%p1672_p12), %v5347_v58, %v2380_v13 }
 0x385   : >> { %v5640_v29 = vmov %v2199_v38  ;;  %v2203_v31 = vsel (%p1672_p12), %vm2202_vm10, %v2199_v38, -1e+30  ;;  %v5363_v38 = vsub.f32 (%p1672_p12), %v2229_v1, %v2276_v48  ;;  %v5403_v1 = vpack.c.bf16 (%p1672_p12), %v2387_v63, %v2380_v13 }
 0x386   : > { %2204 = vmax.xlane.f32.xlu0 %v2203_v31  ;;  %v2218_v29 = vld [vmem:[%s4732_s13 + $0x20] sm:$0xff]  ;;  %v2388_v48 = vsub.f32 %v5349_v2, %v2387_v63  ;;  %v2422_v56 = vand.u32 4294901760, %v5361_v40  ;;  %s3061_s13 = sshll.u32 %s4577_s24, 7 }
 0x387   : > { %v2243_v59 = vand.u32 4294901760, %v2218_v29  ;;  %v2429_v51 = vand.u32 4294901760, %v5363_v38  ;;  %s5530_s8 = scalar_lea.hbm %s5613_s6, %s3061_s13 }
 0x388   : > { %v2423_v11 = vsub.f32 %v5361_v40, %v2422_v56 }
 0x389   : > { %v5288_v22 = vsub.f32 %v2218_v29, %v2243_v59  ;;  %v5304_v19 = vpack.c.bf16 %v2246_v61, %v2243_v59  ;;  %v2346_v59 = vsub.f32 %v5286_v41, %v2345_v16  ;;  %v2340_v61 = vand.u32 4294901760, %v2339_v4 }
 0x38a   : > { %v2396_v4 = vand.u32 4294901760, %v2395_v8  ;;  %v4300_v0 = vpack.c.bf16 %v2429_v51, %v2422_v56  ;;  %v2430_v12 = vsub.f32 %v5363_v38, %v2429_v51  ;;  %v2424_v13 = vand.u32 4294901760, %v2423_v11 }
 0x38b   : > { %4262 = vmatpush3.bf16.msra.mxu0 %v5304_v19  ;;  %4190 = vmatpush3.bf16.msra.mxu1 %v5304_v19  ;;  %v2347_v62 = vand.u32 4294901760, %v2346_v59  ;;  %v2352_v44 = vand.u32 4294901760, %v5288_v22  ;;  %v4246_v8 = vpack.c.bf16 %v5353_v23, %v5351_v10 }
 0x38c   : > { %4263 = vmatprep.subr.bf16.mxu0 %v4595_v3  ;;  %4191 = vmatprep.subr.bf16.mxu1 %v4595_v3  ;;  %v2431_v63 = vand.u32 4294901760, %v2430_v12 }
 0x38d   : > { %v5385_v6 = vpack.c.bf16 %v2347_v62, %v2340_v61  ;;  %v2408_v61 = vand.u32 4294901760, %v5355_v21  ;;  %v2415_v62 = vand.u32 4294901760, %v5357_v43 }
 0x38f   : > { %4265 = vmatpush3.bf16.msra.mxu0 %v5310_v49  ;;  %4193 = vmatpush3.bf16.msra.mxu1 %v5310_v49 }
 0x390   : > { %4266 = vmatprep.subr.bf16.mxu0 %v4595_v3  ;;  %4194 = vmatprep.subr.bf16.mxu1 %v4595_v3 }
 0x393   : > { %4268 = vmatpush3.bf16.msra.mxu0 %v5323_v52  ;;  %4196 = vmatpush3.bf16.msra.mxu1 %v5323_v52 }
 0x394   : > { %4269 = vmatprep.subr.bf16.mxu0 %v4595_v3  ;;  %4197 = vmatprep.subr.bf16.mxu1 %v4595_v3 }
 0x397   : > { %4271 = vmatpush3.bf16.msra.mxu0 %v5331_v42  ;;  %4199 = vmatpush3.bf16.msra.mxu1 %v5331_v42 }
 0x398   : > { %4272 = vmatprep.subr.bf16.mxu0 %v4595_v3  ;;  %4200 = vmatprep.subr.bf16.mxu1 %v4595_v3 }
 0x39b   : > { %4274 = vmatpush3.bf16.msra.mxu0 %v5339_v32  ;;  %4202 = vmatpush3.bf16.msra.mxu1 %v5339_v32 }
 0x39c   : > { %4275 = vmatprep.subr.bf16.mxu0 %v4595_v3  ;;  %4203 = vmatprep.subr.bf16.mxu1 %v4595_v3 }
 0x39f   : > { %4277 = vmatpush3.bf16.msra.mxu0 %v5359_v36  ;;  %4205 = vmatpush3.bf16.msra.mxu1 %v5359_v36 }
 0x3a0   : > { %4278 = vmatprep.subr.bf16.mxu0 %v4595_v3  ;;  %4206 = vmatprep.subr.bf16.mxu1 %v4595_v3 }
 0x413   : > { %v2205_v35 = vpop.xlane.xlu0 %2204 }
 0x414   : > { %v2206_v17 = vsub.f32 %v2203_v31, %v2205_v35  ;;  %v2331_v31 = vand.u32 4294901760, %v5282_v24  ;;  %v5387_v35 = vpack.c.bf16 %v2359_v5, %v2352_v44 }
 0x416   : > { %v2207_v20 = vmul.f32 1.442695, %v2206_v17  ;;  %v5370_v14 = vpack.c.bf16 %v2331_v31, %v2324_v55  ;;  %v2332_v50 = vsub.f32 %v5282_v24, %v2331_v31  ;;  %v2353_v17 = vsub.f32 %v5288_v22, %v2352_v44 }
 0x417   : > { %v2382_v55 = vand.u32 4294901760, %v2381_v26  ;;  %v2389_v31 = vand.u32 4294901760, %v2388_v48  ;;  %v4228_v26 = vpack.c.bf16 %v2431_v63, %v2424_v13  ;;  %v4231_v48 = vpack.c.bf16 %v5282_v24, %v5280_v37 }
 0x418   : > { %4463 = vpow2.f32 %v2207_v20  ;;  %v2333_v60 = vand.u32 4294901760, %v2332_v50  ;;  %v2360_v20 = vsub.f32 %v5294_v18, %v2359_v5  ;;  %v2354_v57 = vand.u32 4294901760, %v2353_v17 }
 0x419   : > { %v2401_v50 = vand.u32 4294901760, %v5353_v23  ;;  %v4297_v5 = vpack.c.bf16 %v2415_v62, %v2408_v61  ;;  %v2409_v17 = vsub.f32 %v5355_v21, %v2408_v61  ;;  %v4252_v37 = vpack.c.bf16 %v5363_v38, %v5361_v40 }
 0x41a   : > { %v5377_v29 = vpack.c.bf16 %v2333_v60, %v2326_v53  ;;  %v2361_v39 = vand.u32 4294901760, %v2360_v20  ;;  %v4219_v53 = vpack.c.bf16 %v2389_v31, %v2382_v55  ;;  %v2416_v20 = vsub.f32 %v5357_v43, %v2415_v62 }
 0x41b   : > { %v4294_v60 = vpack.c.bf16 %v2401_v50, %v2394_v33  ;;  %v2402_v16 = vsub.f32 %v5353_v23, %v2401_v50  ;;  %v4234_v55 = vpack.c.bf16 %v5286_v41, %v5284_v25  ;;  %v4237_v31 = vpack.c.bf16 %v5294_v18, %v5288_v22 }
 0x41c   : > { %v5393_v45 = vpack.c.bf16 %v2361_v39, %v2354_v57  ;;  %v2410_v57 = vand.u32 4294901760, %v2409_v17  ;;  %v2417_v39 = vand.u32 4294901760, %v2416_v20  ;;  %v4240_v33 = vpack.c.bf16 %v5300_v46, %v5298_v7 }
 0x41d   : > { %v2403_v59 = vand.u32 4294901760, %v2402_v16  ;;  %v4243_v50 = vpack.c.bf16 %v5349_v2, %v5347_v58  ;;  %v4249_v16 = vpack.c.bf16 %v5357_v43, %v5355_v21 }
 0x41e   : > { %v4225_v47 = vpack.c.bf16 %v2417_v39, %v2410_v57 }
 0x41f   : > { %v4222_v44 = vpack.c.bf16 %v2403_v59, %v2396_v4 }
 0x422   : > { %v5318_v30 = vpop.eup %4463 }
 0x423   : > { %2209 = vadd.xlane.f32.xlu0 %v5318_v30 }
 0x4b0   : > { %v2210_v24 = vpop.xlane.xlu0 %2209 }
 0x4b1   : > { %4465 = vrcp.f32 %v2210_v24 }
 0x4bb   : > { %v4466_v4 = vpop.eup %4465 }
 0x4bc   : > { %v2212_v59 = vmul.f32 %v4466_v4, %v5318_v30 }
 0x4be   : > { %v5436_v61 = vand.u32 4294901760, %v2212_v59  ;;  %2213 = vst [vmem:[%s5182_s15] sm:$0xff] %v2212_v59 }
 0x4c0   : > { %v5440_v62 = vsub.f32 %v2212_v59, %v5436_v61 }
 0x4c2   : > { %v2313_v17 = vand.u32 4294901760, %v5440_v62 }
 0x4c4   : > { %3846 = vmatmul.mubr.f32.vlgmr.msra.gmra.mrb[0].mxu0 %v2313_v17  ;;  %v2314_v20 = vsub.f32 %v5440_v62, %v2313_v17 }
 0x4c5   : > { %4280 = vmatpush3.bf16.msra.mxu0 %v5370_v14  ;;  %3880 = vmatprep.mubr.msk.f32.mxu0 %vm4596_vm1, %v4597_v15 }
 0x4c6   : > { %4281 = vmatprep.subr.bf16.mxu0 %v4595_v3  ;;  %v2315_v57 = vand.u32 4294901760, %v2314_v20 }
 0x4c8   : > { %3741 = vmatmul.mubr.f32.vlgmr.msra.gmra.mrb[0].mxu1 %v2315_v57 }
 0x4c9   : > { %4208 = vmatpush3.bf16.msra.mxu1 %v5377_v29  ;;  %4283 = vmatpush3.bf16.msra.mxu0 %v5379_v54 }
 0x4ca   : > { %4209 = vmatprep.subr.bf16.mxu1 %v4595_v3  ;;  %4284 = vmatprep.subr.bf16.mxu0 %v4595_v3 }
 0x4cb   : > { %3775 = vmatprep.mubr.msk.f32.mxu1 %vm4596_vm1, %v4597_v15 }
 0x4cd   : > { %4211 = vmatpush3.bf16.msra.mxu1 %v5385_v6  ;;  %4286 = vmatpush3.bf16.msra.mxu0 %v5387_v35 }
 0x4ce   : > { %4212 = vmatprep.subr.bf16.mxu1 %v4595_v3  ;;  %4287 = vmatprep.subr.bf16.mxu0 %v4595_v3 }
 0x4d1   : > { %4214 = vmatpush3.bf16.msra.mxu1 %v5393_v45  ;;  %4289 = vmatpush3.bf16.msra.mxu0 %v5395_v28 }
 0x4d2   : > { %4215 = vmatprep.subr.bf16.mxu1 %v4595_v3  ;;  %4290 = vmatprep.subr.bf16.mxu0 %v4595_v3 }
 0x4d5   : > { %4217 = vmatpush3.bf16.msra.mxu1 %v5401_v34  ;;  %4292 = vmatpush3.bf16.msra.mxu0 %v5403_v1 }
 0x4d6   : > { %4218 = vmatprep.subr.bf16.mxu1 %v4595_v3  ;;  %4293 = vmatprep.subr.bf16.mxu0 %v4595_v3 }
 0x4d9   : > { %4220 = vmatpush3.bf16.msra.mxu1 %v4219_v53  ;;  %4295 = vmatpush3.bf16.msra.mxu0 %v4294_v60 }
 0x4da   : > { %4221 = vmatprep.subr.bf16.mxu1 %v4595_v3  ;;  %4296 = vmatprep.subr.bf16.mxu0 %v4595_v3 }
 0x4dd   : > { %4223 = vmatpush3.bf16.msra.mxu1 %v4222_v44  ;;  %4298 = vmatpush3.bf16.msra.mxu0 %v4297_v5 }
 0x4de   : > { %4224 = vmatprep.subr.bf16.mxu1 %v4595_v3  ;;  %4299 = vmatprep.subr.bf16.mxu0 %v4595_v3 }
 0x4e1   : > { %4226 = vmatpush3.bf16.msra.mxu1 %v4225_v47  ;;  %4301 = vmatpush3.bf16.msra.mxu0 %v4300_v0 }
 0x4e2   : > { %4227 = vmatprep.subr.bf16.mxu1 %v4595_v3  ;;  %4302 = vmatprep.subr.bf16.mxu0 %v4595_v3 }
 0x4e4   : > { %3881 = vmatmul.mubr.f32.vlgmr.msra.gmra.mrb[0].mxu0 %v5436_v61 }
 0x4e5   : > { %4229 = vmatpush3.bf16.msra.mxu1 %v4228_v26  ;;  %4304 = vmatpush3.bf16.msra.mxu0 %v5278_v9 }
 0x4e6   : > { %4230 = vmatprep.subr.bf16.mxu1 %v4595_v3  ;;  %4305 = vmatprep.subr.bf16.mxu0 %v4595_v3 }
 0x4e7   : > { %3915 = vmatprep.mubr.msk.f32.mxu0 %vm4596_vm1, %v4597_v15 }
 0x4e8   : > { %3776 = vmatmul.mubr.f32.vlgmr.msra.gmra.mrb[0].mxu1 %v5436_v61 }
 0x4e9   : > { %4232 = vmatpush3.bf16.msra.mxu1 %v4231_v48  ;;  %4307 = vmatpush3.bf16.msra.mxu0 %v5292_v27 }
 0x4ea   : > { %4233 = vmatprep.subr.bf16.mxu1 %v4595_v3  ;;  %4308 = vmatprep.subr.bf16.mxu0 %v4595_v3 }
 0x4eb   : > { %3810 = vmatprep.mubr.msk.f32.mxu1 %vm4596_vm1, %v4597_v15 }
 0x4ed   : > { %4235 = vmatpush3.bf16.msra.mxu1 %v4234_v55  ;;  %4310 = vmatpush3.bf16.msra.mxu0 %v5304_v19 }
 0x4ee   : > { %4236 = vmatprep.subr.bf16.mxu1 %v4595_v3  ;;  %4311 = vmatprep.subr.bf16.mxu0 %v4595_v3 }
 0x4f1   : > { %4238 = vmatpush3.bf16.msra.mxu1 %v4237_v31  ;;  %4313 = vmatpush3.bf16.msra.mxu0 %v5310_v49 }
 0x4f2   : > { %4239 = vmatprep.subr.bf16.mxu1 %v4595_v3  ;;  %4314 = vmatprep.subr.bf16.mxu0 %v4595_v3 }
 0x4f5   : > { %4241 = vmatpush3.bf16.msra.mxu1 %v4240_v33  ;;  %4316 = vmatpush3.bf16.msra.mxu0 %v5323_v52 }
 0x4f6   : > { %4242 = vmatprep.subr.bf16.mxu1 %v4595_v3  ;;  %4317 = vmatprep.subr.bf16.mxu0 %v4595_v3 }
 0x4f9   : > { %4244 = vmatpush3.bf16.msra.mxu1 %v4243_v50  ;;  %4319 = vmatpush3.bf16.msra.mxu0 %v5331_v42 }
 0x4fa   : > { %4245 = vmatprep.subr.bf16.mxu1 %v4595_v3  ;;  %4320 = vmatprep.subr.bf16.mxu0 %v4595_v3 }
 0x4fd   : > { %4247 = vmatpush3.bf16.msra.mxu1 %v4246_v8  ;;  %4322 = vmatpush3.bf16.msra.mxu0 %v5339_v32 }
 0x4fe   : > { %4248 = vmatprep.subr.bf16.mxu1 %v4595_v3  ;;  %4323 = vmatprep.subr.bf16.mxu0 %v4595_v3 }
 0x501   : > { %4250 = vmatpush3.bf16.msra.mxu1 %v4249_v16  ;;  %4325 = vmatpush3.bf16.msra.mxu0 %v5359_v36 }
 0x502   : > { %4251 = vmatprep.subr.bf16.mxu1 %v4595_v3 }
 0x504   : > { %3916 = vmatmul.mubr.f32.vlgmr.msra.gmra.mrb[0].mxu0 %v5436_v61 }
 0x505   : > { %4253 = vmatpush3.bf16.msra.mxu1 %v4252_v37 }
 0x508   : > { %3811 = vmatmul.mubr.f32.vlgmr.msra.gmra.mrb[0].mxu1 %v5440_v62 }
 0x509   : > { %4480 = shalt.err (!%p4477_p6)
}
 0x50a   : > { %s4481_s15 = scalar_lea.hbm %s5530_s8, 128  ;;  %s4485_s30 = scalar_lea.hbm %s5613_s6, 256 }
 0x50b   : > { %p4482_p7 = scmp.ne.s32.totalorder %s5530_s8, %s4481_s15  ;;  %p4486_p11 = scmp.lt.u32.totalorder %s5530_s8, %s5613_s6 }
 0x50c   : > { %p4487_p12 = scmp.lt.u32.totalorder %s4485_s30, %s4481_s15  ;;  %p4489_p0 = scmp.lt.u32.totalorder %s4481_s15, %s5530_s8 }
 0x50d   : > { %p4483_p9 = pnand %p4482_p7, %p4680_p4 }
 0x50e   : > { %p4488_p13 = por %p4487_p12, %p4486_p11 }
 0x50f   : > { %p4484_p10 = pneg %p4483_p9 }
 0x510   : > { %p4490_p1 = por %p4489_p0, %p4488_p13 }
 0x512   : > { %p4491_p2 = pnand %p4490_p1, %p4484_p10 }
 0x514   : > { %4494 = shalt.err (!%p4491_p2)
}
 0x515   : > { %4377 = dma.vmem_to_hbm [thread:$0]  (%p4680_p4), %s2907_s12, 128, %s5530_s8, %s2878_s16  }
 0x516   : > { %s2892_s18 = sshll.u32 %s5178_s14, 4  ;;  %s5557_s27 = scalar_lea.hbm %s5612_s5, %s3061_s13  ;;  %s5559_s18 = int_to_ptr.vmem [resolvable:$true] %s2892_s18 }
 0x517   : > { %s2873_s8 = scalar_lea.sflag [#allocation4], %s4696_s11  ;;  %s4495_s12 = scalar_lea.vmem %s5559_s18, 128 }
 0x518   : > { %p4496_p3 = scmp.ne.s32.totalorder %s5559_s18, %s4495_s12  ;;  %s4604_s16 = smov [#allocation3]  }
 0x519   : > { %s4499_s24 = sshll.u32 %s4604_s16, 4  ;;  %s4500_s24 = int_to_ptr.vmem [resolvable:$false] %s4499_s24 }
 0x51a   : > { %p4497_p5 = pnand %p4496_p3, %p4680_p4  ;;  %s4501_s28 = scalar_lea.vmem %s4500_s24, 256 }
 0x51b   : > { %p4502_p7 = scmp.lt.s32.totalorder %s5559_s18, %s4500_s24  ;;  %p4503_p9 = scmp.lt.s32.totalorder %s4501_s28, %s4495_s12 }
 0x51c   : > { %p4498_p6 = pneg %p4497_p5 }
 0x51d   : > { %p4504_p10 = por %p4503_p9, %p4502_p7 }
 0x51f   : > { %p4505_p11 = pnand %p4504_p10, %p4498_p6 }
 0x5d7   : > { %v2867_v3 = vpop.f32.mrb[0].mxu0 }
 0x5d8   : > { %v3917_v15 = vpop.f32.mrb[1].mxu0 }
 0x5db   : > { %v2572_v9 = vpop.f32.mrb[0].mxu1 }
 0x5dc   : > { %v4365_v25 = vadd.f32 %v2867_v3, %v2572_v9  ;;  %v3812_v41 = vpop.f32.mrb[1].mxu1 }
 0x5de   : > { %2871 = vst.msk [vmem:[%s5178_s14] sm:$0xff] %vm310_vm0, %v4365_v25 }
 0x5df   : > { %4508 = shalt.err (!%p4505_p11)
}
 0x5e0   : > { %s4509_s11 = scalar_lea.hbm %s5557_s27, 128  ;;  %s4513_s30 = scalar_lea.hbm %s5612_s5, 256 }
 0x5e1   : > { %p4510_p12 = scmp.ne.s32.totalorder %s5557_s27, %s4509_s11  ;;  %p4514_p1 = scmp.lt.u32.totalorder %s5557_s27, %s5612_s5 }
 0x5e2   : > { %p4515_p2 = scmp.lt.u32.totalorder %s4513_s30, %s4509_s11  ;;  %p4517_p5 = scmp.lt.u32.totalorder %s4509_s11, %s5557_s27 }
 0x5e3   : > { %p4511_p13 = pnand %p4510_p12, %p4680_p4 }
 0x5e4   : > { %p4516_p3 = por %p4515_p2, %p4514_p1 }
 0x5e5   : > { %p4512_p0 = pneg %p4511_p13 }
 0x5e6   : > { %p4518_p6 = por %p4517_p5, %p4516_p3 }
 0x5e8   : > { %p4519_p7 = pnand %p4518_p6, %p4512_p0 }
 0x5ea   : > { %4522 = shalt.err (!%p4519_p7)
}
 0x5eb   : > { %4376 = dma.vmem_to_hbm [thread:$0]  (%p4680_p4), %s5559_s18, 128, %s5557_s27, %s2873_s8  }
 0x5ec PF: > { %p4387_p9 = scmp.ge.s32.totalorder %s4585_s26, 2  ;;  %s2918_s20 = sand.u32 1, %s4565_s21  }
 0x5ed   : > { %s2919_s15 = scalar_lea.sflag [#allocation4], %s2918_s20 }
 0x5ee   : > { %p4381_p10 = pnand %p4387_p9, %p4687_p8 }
 0x5f0   : > { %4556 = dma.done.wait (!%p4381_p10), %s2919_s15, 128  }
 0x5f1   : > { %4558 = vsyncadd (!%p4381_p10), %s2919_s15, 4294967168  ;;  %s2928_s12 = scalar_lea.sflag [#allocation6], %s2918_s20 }
 0x5f2   : > { %4560 = dma.done.wait (!%p4381_p10), %s2928_s12, 128  }
 0x5f3   : > { %4562 = vsyncadd (!%p4381_p10), %s2928_s12, 4294967168  ;;  %s23_s26 = sadd.s32 1, %s4585_s26   ;;  %s5641_s21 = smov %s4569_s22 }
 0x5f4   : > { %p20_p11 = scmp.ge.s32.totalorder %s23_s26, 4   ;;  %s5642_s22 = smov %s4573_s23 }
 0x5f5   : > { %s5643_s23 = smov %s4693_s10  ;;  %s5644_s24 = smov %s4581_s25 }
 0x5f6   : > { %s5645_s25 = smov %s5647_s29  ;;  %22 = sbr.rel (!%p20_p11) target bundleno = 6 (0x6), region = 115 }
 0x5fd   :  { %2933 = vsyncpa [#allocation4], 1 }
 0x5fe   :  { %2935 = vsyncpa [#allocation4 + $0x1], 1 }
 0x5ff   :  { %2936 = vsyncpa [#allocation6], 1 }
 0x600   :  { %2938 = vsyncpa [#allocation6 + $0x1], 1 }

</bundles_post_ra>
